<compile_context>
chip_gen: v5e
topology: v5e:2x2
jax: 0.10.0
libtpu: 0.0.40
codegen_flags: <defaults>
</compile_context>

<pallas_src>
import jax
import jax.numpy as jnp
import numpy as np
from jax import lax
from jax.experimental import pallas as pl
from jax.experimental.pallas import tpu as pltpu

# ---- hyperparameters (mirrors MultiHopAttBiLSTM.__init__; hidden_size == hidden_dim) ----
VOCAB = 50
EMB_DIM = 16
HIDDEN = 32          # hidden_dim -> BiLSTM output feature dim = 2*HIDDEN
OUT_DIM = 1          # final-layer fold below assumes OUT_DIM == 1
D_A = 200
R = 20
H_L = 100
BATCH = 2
SEQ = 8

H2 = 2 * HIDDEN      # 64  : bidirectional feature width
G8 = 8 * HIDDEN      # 256 : fused gate width (4 gates x 2 directions)

_VMEM = pl.BlockSpec(memory_space=pltpu.MemorySpace.VMEM)


# ----------------------------------------------------------------------------
# Fused kernel: BiLSTM (both directions, one loop) + attention + folded head
# ----------------------------------------------------------------------------
def fused_kernel(emb_ref, len_ref, rowb_ref, wi_ref, bi_ref, wh_ref,
                 w1_ref, b1_ref, w2_ref, b2_ref, wff_ref, bf_ref,
                 logits_ref, attn_ref):
    f32 = jnp.float32
    bf16 = jnp.bfloat16

    # Hoisted input projection: all timesteps, both directions, one matmul.
    # emb_ref row s*B+b = [emb(t=s, b) | emb(t=T-1-s, b)]  (bf16), so gx row
    # s*B+b already holds the fused fwd(t=s) / bwd(t=T-1-s) gate inputs.
    gx = jnp.dot(emb_ref[...], wi_ref[...],
                 preferred_element_type=f32) + bi_ref[...]          # (T*B, 8H) f32

    lens = len_ref[...]                                             # (B, 1) int32
    whc = wh_ref[...]                                               # (2H, 8H) bf16
    lane = lax.broadcasted_iota(jnp.int32, (BATCH, H2), 1)          # (B, 2H)
    is_fwd = lane < HIDDEN
    is_bwd = jnp.logical_not(is_fwd)

    h = jnp.zeros((BATCH, H2), f32)                                 # [h_f | h_b]
    c = jnp.zeros((BATCH, H2), f32)                                 # [c_f | c_b]

    fwd_out = []                 # fwd_out[t] = (B, H) masked forward h at time t
    bwd_out = [None] * SEQ       # bwd_out[t] = (B, H) masked backward h at time t

    # Fused fwd+bwd recurrence, fully unrolled (SEQ = 8, static slices only).
    for s in range(SEQ):
        tb = SEQ - 1 - s                                            # backward time index
        gxs = gx[s * BATCH:(s + 1) * BATCH, :]                      # (B, 8H)
        gates = gxs + jnp.dot(h.astype(bf16), whc,
                              preferred_element_type=f32)           # (B, 8H)

        i_a = jax.nn.sigmoid(gates[:, 0:H2])                        # [i_f | i_b]
        f_a = jax.nn.sigmoid(gates[:, H2:2 * H2])                   # [f_f | f_b]
        g_a = jnp.tanh(gates[:, 2 * H2:3 * H2])                     # [g_f | g_b]
        o_a = jax.nn.sigmoid(gates[:, 3 * H2:4 * H2])               # [o_f | o_b]

        c_new = f_a * c + i_a * g_a
        h_new = o_a * jnp.tanh(c_new)

        # pack_padded_sequence semantics: per-direction validity mask
        valid = (is_fwd & (s < lens)) | (is_bwd & (tb < lens))      # (B, 2H) bool
        mh = jnp.where(valid, h_new, 0.0)                           # zero at padding
        fwd_out.append(mh[:, 0:HIDDEN])
        bwd_out[tb] = mh[:, HIDDEN:H2]

        h = jnp.where(valid, h_new, h)                              # freeze past length
        c = jnp.where(valid, c_new, c)

    # Assemble BiLSTM output in registers (no scatter stores):
    # time-major rows (row = t*B + b), columns [fwd | bwd].
    x_tm = jnp.concatenate(
        [jnp.concatenate(fwd_out, axis=0),
         jnp.concatenate(bwd_out, axis=0)], axis=1)                 # (T*B, 2H) f32
    x_b16 = x_tm.astype(bf16)

    # ---- attention: linear_first / linear_second batched over all B*T rows
    act = jnp.tanh(jnp.dot(x_b16, w1_ref[...],
                           preferred_element_type=f32) + b1_ref[...])   # (T*B, D_A)
    scores = jnp.dot(act.astype(bf16), w2_ref[...],
                     preferred_element_type=f32) + b2_ref[...]          # (T*B, R)

    rowb = rowb_ref[...]                                            # (T*B, 1) int32
    wff = wff_ref[...]                                              # (R, 2H) f32
    p_all = jnp.zeros_like(scores)
    logit_rows = []
    for b in range(BATCH):                                          # B = 2 static
        mb = rowb == b                                              # (T*B, 1) bool
        sb = jnp.where(mb, scores, -1e30)
        m = jnp.max(sb, axis=0, keepdims=True)                      # (1, R)
        e = jnp.where(mb, jnp.exp(scores - m), 0.0)                 # (T*B, R)
        p = e * pl.reciprocal(jnp.sum(e, axis=0, keepdims=True), approx=True)
        p_all = p_all + p                                           # other-batch rows are 0

        # hidden_matrix block for batch b: (R, 2H) = p_b^T @ x_b, with the batch
        # selection folded in via the zero rows of p (transpose folded into
        # dot_general dimension_numbers).
        hid = lax.dot_general(p.astype(bf16), x_b16,
                              dimension_numbers=(((0,), (0,)), ((), ())),
                              preferred_element_type=f32)           # (R, 2H)

        # linear_final . label folded (exact, no nonlinearity between them):
        # logits_b = vec(hid) . (wf_flat @ wl) + (bf @ wl + bl)
        logit_rows.append(jnp.sum(hid * wff, keepdims=True))        # (1, 1)

    attn_ref[...] = p_all.astype(attn_ref.dtype)                    # (T*B, R); unpacked in wrapper
    logits_ref[...] = (jnp.concatenate(logit_rows, axis=0)
                       + bf_ref[...]).astype(logits_ref.dtype)      # (B, OUT_DIM)


# ----------------------------------------------------------------------------
# Wrapper
# ----------------------------------------------------------------------------
def _spread(w, is_forward):
    """(n, 4H) [i|f|g|o] -> (n, 8H) gate-major, fwd/bwd-interleaved slots."""
    n = w.shape[0]
    w4 = w.reshape(n, 4, HIDDEN)
    z = jnp.zeros_like(w4)
    pair = (w4, z) if is_forward else (z, w4)
    return jnp.stack(pair, axis=2).reshape(n, 8 * HIDDEN)


@jax.jit
def forward(tokens, lengths, p):
    bf16 = jnp.bfloat16
    # embedding lookup + (identity, eval-mode) dropout: plain-JAX glue
    emb = jnp.take(p['emb'], tokens, axis=0)                        # (B, T, E)
    emb_t = jnp.transpose(emb, (1, 0, 2))                           # (T, B, E)
    # row t*B+b = [emb(t, b) | emb(T-1-t, b)] : fwd + time-reversed bwd inputs
    emb_pair = jnp.concatenate([emb_t, emb_t[::-1]], axis=-1)
    emb_pair = emb_pair.reshape(SEQ * BATCH, 2 * EMB_DIM).astype(bf16)

    lens_b1 = lengths.reshape(BATCH, 1).astype(jnp.int32)
    row_batch = jnp.tile(jnp.arange(BATCH, dtype=jnp.int32),
                         SEQ).reshape(SEQ * BATCH, 1)               # row -> batch id

    # fuse per-direction LSTM weights into the interleaved-gate layout (bf16)
    wi_both = jnp.concatenate([_spread(p['wi_f'], True),
                               _spread(p['wi_b'], False)], axis=0).astype(bf16)  # (2E, 8H)
    b_both = _spread(p['b_f'], True) + _spread(p['b_b'], False)                  # (1, 8H) f32
    wh_cat = jnp.concatenate([_spread(p['wh_f'], True),
                              _spread(p['wh_b'], False)], axis=0).astype(bf16)   # (2H, 8H)

    # fold linear_final . label (exact; OUT_DIM == 1)
    wf_flat = p['wf'].reshape(R * 2 * HIDDEN, H_L)                  # (R*2H, H_L)
    wff = (wf_flat @ p['wl']).reshape(R, 2 * HIDDEN)                # (R, 2H) f32
    b_fold = p['bf'] @ p['wl'] + p['bl']                            # (1, OUT_DIM)

    logits, attn_packed = pl.pallas_call(
        fused_kernel,
        out_shape=(jax.ShapeDtypeStruct((BATCH, OUT_DIM), jnp.float32),
                   jax.ShapeDtypeStruct((SEQ * BATCH, R), jnp.float32)),
        in_specs=[_VMEM] * 12,
        out_specs=(_VMEM, _VMEM),
    )(emb_pair, lens_b1, row_batch, wi_both, b_both, wh_cat,
      p['w1'].astype(bf16), p['b1'], p['w2'].astype(bf16), p['b2'], wff, b_fold)

    # unpack attention: row t*B+b -> (B, R, T)
    attn = jnp.transpose(attn_packed.reshape(SEQ, BATCH, R), (1, 2, 0))
    return logits.reshape(-1), attn                                 # (B*OUT_DIM,), (B, R, T)


# ----------------------------------------------------------------------------
# Deterministic parameter construction
# ----------------------------------------------------------------------------
def init_params(key):
    ks = jax.random.split(key, 15)

    def g(k, shape, scale=0.1):
        return (scale * jax.random.normal(k, shape)).astype(jnp.float32)

    return {
        'emb':  g(ks[0], (VOCAB, EMB_DIM), 1.0),
        'wi_f': g(ks[1], (EMB_DIM, 4 * HIDDEN)),
        'wh_f': g(ks[2], (HIDDEN, 4 * HIDDEN)),
        'b_f':  g(ks[3], (1, 4 * HIDDEN)),               # bias_ih + bias_hh (combined)
        'wi_b': g(ks[4], (EMB_DIM, 4 * HIDDEN)),
        'wh_b': g(ks[5], (HIDDEN, 4 * HIDDEN)),
        'b_b':  g(ks[6], (1, 4 * HIDDEN)),
        'w1':   g(ks[7], (2 * HIDDEN, D_A)),             # linear_first
        'b1':   g(ks[8], (1, D_A)),
        'w2':   g(ks[9], (D_A, R)),                      # linear_second
        'b2':   g(ks[10], (1, R)),
        'wf':   g(ks[11], (R, 2 * HIDDEN, H_L)),         # linear_final, pre-reshaped (r, 2H, h_l)
        'bf':   g(ks[12], (1, H_L)),
        'wl':   g(ks[13], (H_L, OUT_DIM)),               # label
        'bl':   g(ks[14], (1, OUT_DIM)),
    }


# ----------------------------------------------------------------------------
# Pure NumPy reference (mirrors the PyTorch forward, eval mode)
# ----------------------------------------------------------------------------
def reference(tokens, lengths, p):
    tokens = np.asarray(tokens)
    lengths = np.asarray(lengths)
    emb = np.asarray(p['emb'], np.float64)[tokens]        # (B, T, E)
    B, T, _ = emb.shape
    H = HIDDEN

    def sig(x):
        return 1.0 / (1.0 + np.exp(-x))

    def run_dir(wi, wh, bias, reverse):
        out = np.zeros((B, T, H), np.float64)
        for bi in range(B):
            h = np.zeros(H)
            c = np.zeros(H)
            ts = range(T - 1, -1, -1) if reverse else range(T)
            for t in ts:
                if t >= lengths[bi]:
                    continue
                gts = emb[bi, t] @ wi + h @ wh + bias[0]
                i = sig(gts[:H]); f = sig(gts[H:2 * H])
                gg = np.tanh(gts[2 * H:3 * H]); o = sig(gts[3 * H:])
                c = f * c + i * gg
                h = o * np.tanh(c)
                out[bi, t] = h
        return out

    f64 = lambda k: np.asarray(p[k], np.float64)
    of = run_dir(f64('wi_f'), f64('wh_f'), f64('b_f'), False)
    ob = run_dir(f64('wi_b'), f64('wh_b'), f64('b_b'), True)
    lstm_out = np.concatenate([of, ob], axis=-1)          # (B, T, 2H)

    act = np.tanh(lstm_out @ f64('w1') + f64('b1')[0])
    scores = act @ f64('w2') + f64('b2')[0]               # (B, T, R)
    s_t = np.transpose(scores, (0, 2, 1))                 # (B, R, T)
    e = np.exp(s_t - s_t.max(-1, keepdims=True))
    attn = e / e.sum(-1, keepdims=True)
    hidden = attn @ lstm_out                              # (B, R, 2H)
    flat = hidden.reshape(B, R * 2 * H)
    wf_flat = f64('wf').reshape(R * 2 * H, H_L)
    sent = flat @ wf_flat + f64('bf')[0]
    out = sent @ f64('wl') + f64('bl')[0]
    return out.reshape(-1), attn


if __name__ == "__main__":
    key = jax.random.PRNGKey(0)
    pkey, tkey = jax.random.split(key)
    params = init_params(pkey)

    tokens = jax.random.randint(tkey, (BATCH, SEQ), 0, VOCAB, dtype=jnp.int32)
    lengths = jnp.array([SEQ, 5], dtype=jnp.int32)        # 'original_review_length'

    logits, attn = forward(tokens, lengths, params)
    jax.block_until_ready((logits, attn))

    ref_logits, ref_attn = reference(tokens, lengths, params)
    assert logits.shape == (BATCH * OUT_DIM,)
    assert attn.shape == (BATCH, R, SEQ)
    assert np.allclose(np.asarray(logits), ref_logits, atol=5e-2, rtol=5e-2)
    assert np.allclose(np.asarray(attn), ref_attn, atol=5e-2, rtol=5e-2)

    print("KERNEL_OK")
</pallas_src>

<mosaic_0001>
module attributes {stable_mosaic.version = 11 : i64} {
  func.func @fused_kernel(%arg0: memref<16x32xbf16, #tpu.memory_space<vmem>>, %arg1: memref<2x1xi32, #tpu.memory_space<vmem>>, %arg2: memref<16x1xi32, #tpu.memory_space<vmem>>, %arg3: memref<32x256xbf16, #tpu.memory_space<vmem>>, %arg4: memref<1x256xf32, #tpu.memory_space<vmem>>, %arg5: memref<64x256xbf16, #tpu.memory_space<vmem>>, %arg6: memref<64x200xbf16, #tpu.memory_space<vmem>>, %arg7: memref<1x200xf32, #tpu.memory_space<vmem>>, %arg8: memref<200x20xbf16, #tpu.memory_space<vmem>>, %arg9: memref<1x20xf32, #tpu.memory_space<vmem>>, %arg10: memref<20x64xf32, #tpu.memory_space<vmem>>, %arg11: memref<1x1xf32, #tpu.memory_space<vmem>>, %arg12: memref<2x1xf32, #tpu.memory_space<vmem>>, %arg13: memref<16x20xf32, #tpu.memory_space<vmem>>) attributes {dimension_semantics = [], scalar_prefetch = 0 : i64, scratch_operands = 0 : i64, tpu.core_type = #tpu.core_type<tc>} {
    %c0 = arith.constant 0 : index
    %c0_0 = arith.constant 0 : index
    %0 = vector.load %arg0[%c0, %c0_0] : memref<16x32xbf16, #tpu.memory_space<vmem>>, vector<16x32xbf16>
    %c0_1 = arith.constant 0 : index
    %c0_2 = arith.constant 0 : index
    %1 = vector.load %arg3[%c0_1, %c0_2] : memref<32x256xbf16, #tpu.memory_space<vmem>>, vector<32x256xbf16>
    %cst = arith.constant dense<0.000000e+00> : vector<16x256xf32>
    %2 = tpu.matmul %0, %1, %cst {dimension_numbers = #tpu.dot_dimension_numbers<[1], [0], [0], [1], [0, 0, 1, 1], [], []>} : vector<16x32xbf16>, vector<32x256xbf16>, vector<16x256xf32> -> vector<16x256xf32>
    %c0_3 = arith.constant 0 : index
    %c0_4 = arith.constant 0 : index
    %3 = vector.load %arg4[%c0_3, %c0_4] : memref<1x256xf32, #tpu.memory_space<vmem>>, vector<1x256xf32>
    %4 = vector.broadcast %3 : vector<1x256xf32> to vector<16x256xf32>
    %5 = arith.addf %2, %4 : vector<16x256xf32>
    %c0_5 = arith.constant 0 : index
    %c0_6 = arith.constant 0 : index
    %6 = vector.load %arg1[%c0_5, %c0_6] : memref<2x1xi32, #tpu.memory_space<vmem>>, vector<2x1xi32>
    %c0_7 = arith.constant 0 : index
    %c0_8 = arith.constant 0 : index
    %7 = vector.load %arg5[%c0_7, %c0_8] : memref<64x256xbf16, #tpu.memory_space<vmem>>, vector<64x256xbf16>
    %8 = tpu.iota {dimensions = array<i32: 1>} : vector<2x64xi32>
    %c32_i32 = arith.constant 32 : i32
    %9 = vector.broadcast %c32_i32 : i32 to vector<2x64xi32>
    %10 = arith.cmpi slt, %8, %9 : vector<2x64xi32>
    %cst_9 = arith.constant dense<true> : vector<2x64xi1>
    %11 = arith.xori %10, %cst_9 : vector<2x64xi1>
    %cst_10 = arith.constant 0.000000e+00 : f32
    %12 = vector.broadcast %cst_10 : f32 to vector<2x64xf32>
    %cst_11 = arith.constant 0.000000e+00 : f32
    %13 = vector.broadcast %cst_11 : f32 to vector<2x64xf32>
    %14 = vector.extract_strided_slice %5 {offsets = [0, 0], sizes = [2, 256], strides = [1, 1]} : vector<16x256xf32> to vector<2x256xf32>
    %15 = arith.truncf %12 : vector<2x64xf32> to vector<2x64xbf16>
    %cst_12 = arith.constant dense<0.000000e+00> : vector<2x256xf32>
    %16 = tpu.matmul %15, %7, %cst_12 {dimension_numbers = #tpu.dot_dimension_numbers<[1], [0], [0], [1], [0, 0, 1, 1], [], []>} : vector<2x64xbf16>, vector<64x256xbf16>, vector<2x256xf32> -> vector<2x256xf32>
    %17 = arith.addf %14, %16 : vector<2x256xf32>
    %18 = vector.extract_strided_slice %17 {offsets = [0, 0], sizes = [2, 64], strides = [1, 1]} : vector<2x256xf32> to vector<2x64xf32>
    %19 = arith.negf %18 : vector<2x64xf32>
    %20 = math.exp %19 : vector<2x64xf32>
    %cst_13 = arith.constant 1.000000e+00 : f32
    %21 = vector.broadcast %cst_13 : f32 to vector<2x64xf32>
    %22 = arith.addf %21, %20 : vector<2x64xf32>
    %23 = arith.divf %21, %22 : vector<2x64xf32>
    %24 = vector.extract_strided_slice %17 {offsets = [0, 64], sizes = [2, 64], strides = [1, 1]} : vector<2x256xf32> to vector<2x64xf32>
    %25 = arith.negf %24 : vector<2x64xf32>
    %26 = math.exp %25 : vector<2x64xf32>
    %cst_14 = arith.constant 1.000000e+00 : f32
    %27 = vector.broadcast %cst_14 : f32 to vector<2x64xf32>
    %28 = arith.addf %27, %26 : vector<2x64xf32>
    %29 = arith.divf %27, %28 : vector<2x64xf32>
    %30 = vector.extract_strided_slice %17 {offsets = [0, 128], sizes = [2, 64], strides = [1, 1]} : vector<2x256xf32> to vector<2x64xf32>
    %31 = math.tanh %30 : vector<2x64xf32>
    %32 = vector.extract_strided_slice %17 {offsets = [0, 192], sizes = [2, 64], strides = [1, 1]} : vector<2x256xf32> to vector<2x64xf32>
    %33 = arith.negf %32 : vector<2x64xf32>
    %34 = math.exp %33 : vector<2x64xf32>
    %cst_15 = arith.constant 1.000000e+00 : f32
    %35 = vector.broadcast %cst_15 : f32 to vector<2x64xf32>
    %36 = arith.addf %35, %34 : vector<2x64xf32>
    %37 = arith.divf %35, %36 : vector<2x64xf32>
    %38 = arith.mulf %29, %13 : vector<2x64xf32>
    %39 = arith.mulf %23, %31 : vector<2x64xf32>
    %40 = arith.addf %38, %39 : vector<2x64xf32>
    %41 = math.tanh %40 : vector<2x64xf32>
    %42 = arith.mulf %37, %41 : vector<2x64xf32>
    %c0_i32 = arith.constant 0 : i32
    %43 = vector.broadcast %c0_i32 : i32 to vector<2x1xi32>
    %44 = arith.cmpi sgt, %6, %43 : vector<2x1xi32>
    %45 = vector.broadcast %44 : vector<2x1xi1> to vector<2x64xi1>
    %46 = arith.andi %10, %45 : vector<2x64xi1>
    %c7_i32 = arith.constant 7 : i32
    %47 = vector.broadcast %c7_i32 : i32 to vector<2x1xi32>
    %48 = arith.cmpi sgt, %6, %47 : vector<2x1xi32>
    %49 = vector.broadcast %48 : vector<2x1xi1> to vector<2x64xi1>
    %50 = arith.andi %11, %49 : vector<2x64xi1>
    %51 = arith.ori %46, %50 : vector<2x64xi1>
    %cst_16 = arith.constant 0.000000e+00 : f32
    %52 = vector.broadcast %cst_16 : f32 to vector<2x64xf32>
    %53 = arith.select %51, %42, %52 : vector<2x64xi1>, vector<2x64xf32>
    %54 = vector.extract_strided_slice %53 {offsets = [0, 0], sizes = [2, 32], strides = [1, 1]} : vector<2x64xf32> to vector<2x32xf32>
    %55 = vector.extract_strided_slice %53 {offsets = [0, 32], sizes = [2, 32], strides = [1, 1]} : vector<2x64xf32> to vector<2x32xf32>
    %56 = arith.select %51, %42, %12 : vector<2x64xi1>, vector<2x64xf32>
    %57 = arith.select %51, %40, %13 : vector<2x64xi1>, vector<2x64xf32>
    %58 = vector.extract_strided_slice %5 {offsets = [2, 0], sizes = [2, 256], strides = [1, 1]} : vector<16x256xf32> to vector<2x256xf32>
    %59 = arith.truncf %56 : vector<2x64xf32> to vector<2x64xbf16>
    %cst_17 = arith.constant dense<0.000000e+00> : vector<2x256xf32>
    %60 = tpu.matmul %59, %7, %cst_17 {dimension_numbers = #tpu.dot_dimension_numbers<[1], [0], [0], [1], [0, 0, 1, 1], [], []>} : vector<2x64xbf16>, vector<64x256xbf16>, vector<2x256xf32> -> vector<2x256xf32>
    %61 = arith.addf %58, %60 : vector<2x256xf32>
    %62 = vector.extract_strided_slice %61 {offsets = [0, 0], sizes = [2, 64], strides = [1, 1]} : vector<2x256xf32> to vector<2x64xf32>
    %63 = arith.negf %62 : vector<2x64xf32>
    %64 = math.exp %63 : vector<2x64xf32>
    %cst_18 = arith.constant 1.000000e+00 : f32
    %65 = vector.broadcast %cst_18 : f32 to vector<2x64xf32>
    %66 = arith.addf %65, %64 : vector<2x64xf32>
    %67 = arith.divf %65, %66 : vector<2x64xf32>
    %68 = vector.extract_strided_slice %61 {offsets = [0, 64], sizes = [2, 64], strides = [1, 1]} : vector<2x256xf32> to vector<2x64xf32>
    %69 = arith.negf %68 : vector<2x64xf32>
    %70 = math.exp %69 : vector<2x64xf32>
    %cst_19 = arith.constant 1.000000e+00 : f32
    %71 = vector.broadcast %cst_19 : f32 to vector<2x64xf32>
    %72 = arith.addf %71, %70 : vector<2x64xf32>
    %73 = arith.divf %71, %72 : vector<2x64xf32>
    %74 = vector.extract_strided_slice %61 {offsets = [0, 128], sizes = [2, 64], strides = [1, 1]} : vector<2x256xf32> to vector<2x64xf32>
    %75 = math.tanh %74 : vector<2x64xf32>
    %76 = vector.extract_strided_slice %61 {offsets = [0, 192], sizes = [2, 64], strides = [1, 1]} : vector<2x256xf32> to vector<2x64xf32>
    %77 = arith.negf %76 : vector<2x64xf32>
    %78 = math.exp %77 : vector<2x64xf32>
    %cst_20 = arith.constant 1.000000e+00 : f32
    %79 = vector.broadcast %cst_20 : f32 to vector<2x64xf32>
    %80 = arith.addf %79, %78 : vector<2x64xf32>
    %81 = arith.divf %79, %80 : vector<2x64xf32>
    %82 = arith.mulf %73, %57 : vector<2x64xf32>
    %83 = arith.mulf %67, %75 : vector<2x64xf32>
    %84 = arith.addf %82, %83 : vector<2x64xf32>
    %85 = math.tanh %84 : vector<2x64xf32>
    %86 = arith.mulf %81, %85 : vector<2x64xf32>
    %c1_i32 = arith.constant 1 : i32
    %87 = vector.broadcast %c1_i32 : i32 to vector<2x1xi32>
    %88 = arith.cmpi sgt, %6, %87 : vector<2x1xi32>
    %89 = vector.broadcast %88 : vector<2x1xi1> to vector<2x64xi1>
    %90 = arith.andi %10, %89 : vector<2x64xi1>
    %c6_i32 = arith.constant 6 : i32
    %91 = vector.broadcast %c6_i32 : i32 to vector<2x1xi32>
    %92 = arith.cmpi sgt, %6, %91 : vector<2x1xi32>
    %93 = vector.broadcast %92 : vector<2x1xi1> to vector<2x64xi1>
    %94 = arith.andi %11, %93 : vector<2x64xi1>
    %95 = arith.ori %90, %94 : vector<2x64xi1>
    %cst_21 = arith.constant 0.000000e+00 : f32
    %96 = vector.broadcast %cst_21 : f32 to vector<2x64xf32>
    %97 = arith.select %95, %86, %96 : vector<2x64xi1>, vector<2x64xf32>
    %98 = vector.extract_strided_slice %97 {offsets = [0, 0], sizes = [2, 32], strides = [1, 1]} : vector<2x64xf32> to vector<2x32xf32>
    %99 = vector.extract_strided_slice %97 {offsets = [0, 32], sizes = [2, 32], strides = [1, 1]} : vector<2x64xf32> to vector<2x32xf32>
    %100 = arith.select %95, %86, %56 : vector<2x64xi1>, vector<2x64xf32>
    %101 = arith.select %95, %84, %57 : vector<2x64xi1>, vector<2x64xf32>
    %102 = vector.extract_strided_slice %5 {offsets = [4, 0], sizes = [2, 256], strides = [1, 1]} : vector<16x256xf32> to vector<2x256xf32>
    %103 = arith.truncf %100 : vector<2x64xf32> to vector<2x64xbf16>
    %cst_22 = arith.constant dense<0.000000e+00> : vector<2x256xf32>
    %104 = tpu.matmul %103, %7, %cst_22 {dimension_numbers = #tpu.dot_dimension_numbers<[1], [0], [0], [1], [0, 0, 1, 1], [], []>} : vector<2x64xbf16>, vector<64x256xbf16>, vector<2x256xf32> -> vector<2x256xf32>
    %105 = arith.addf %102, %104 : vector<2x256xf32>
    %106 = vector.extract_strided_slice %105 {offsets = [0, 0], sizes = [2, 64], strides = [1, 1]} : vector<2x256xf32> to vector<2x64xf32>
    %107 = arith.negf %106 : vector<2x64xf32>
    %108 = math.exp %107 : vector<2x64xf32>
    %cst_23 = arith.constant 1.000000e+00 : f32
    %109 = vector.broadcast %cst_23 : f32 to vector<2x64xf32>
    %110 = arith.addf %109, %108 : vector<2x64xf32>
    %111 = arith.divf %109, %110 : vector<2x64xf32>
    %112 = vector.extract_strided_slice %105 {offsets = [0, 64], sizes = [2, 64], strides = [1, 1]} : vector<2x256xf32> to vector<2x64xf32>
    %113 = arith.negf %112 : vector<2x64xf32>
    %114 = math.exp %113 : vector<2x64xf32>
    %cst_24 = arith.constant 1.000000e+00 : f32
    %115 = vector.broadcast %cst_24 : f32 to vector<2x64xf32>
    %116 = arith.addf %115, %114 : vector<2x64xf32>
    %117 = arith.divf %115, %116 : vector<2x64xf32>
    %118 = vector.extract_strided_slice %105 {offsets = [0, 128], sizes = [2, 64], strides = [1, 1]} : vector<2x256xf32> to vector<2x64xf32>
    %119 = math.tanh %118 : vector<2x64xf32>
    %120 = vector.extract_strided_slice %105 {offsets = [0, 192], sizes = [2, 64], strides = [1, 1]} : vector<2x256xf32> to vector<2x64xf32>
    %121 = arith.negf %120 : vector<2x64xf32>
    %122 = math.exp %121 : vector<2x64xf32>
    %cst_25 = arith.constant 1.000000e+00 : f32
    %123 = vector.broadcast %cst_25 : f32 to vector<2x64xf32>
    %124 = arith.addf %123, %122 : vector<2x64xf32>
    %125 = arith.divf %123, %124 : vector<2x64xf32>
    %126 = arith.mulf %117, %101 : vector<2x64xf32>
    %127 = arith.mulf %111, %119 : vector<2x64xf32>
    %128 = arith.addf %126, %127 : vector<2x64xf32>
    %129 = math.tanh %128 : vector<2x64xf32>
    %130 = arith.mulf %125, %129 : vector<2x64xf32>
    %c2_i32 = arith.constant 2 : i32
    %131 = vector.broadcast %c2_i32 : i32 to vector<2x1xi32>
    %132 = arith.cmpi sgt, %6, %131 : vector<2x1xi32>
    %133 = vector.broadcast %132 : vector<2x1xi1> to vector<2x64xi1>
    %134 = arith.andi %10, %133 : vector<2x64xi1>
    %c5_i32 = arith.constant 5 : i32
    %135 = vector.broadcast %c5_i32 : i32 to vector<2x1xi32>
    %136 = arith.cmpi sgt, %6, %135 : vector<2x1xi32>
    %137 = vector.broadcast %136 : vector<2x1xi1> to vector<2x64xi1>
    %138 = arith.andi %11, %137 : vector<2x64xi1>
    %139 = arith.ori %134, %138 : vector<2x64xi1>
    %cst_26 = arith.constant 0.000000e+00 : f32
    %140 = vector.broadcast %cst_26 : f32 to vector<2x64xf32>
    %141 = arith.select %139, %130, %140 : vector<2x64xi1>, vector<2x64xf32>
    %142 = vector.extract_strided_slice %141 {offsets = [0, 0], sizes = [2, 32], strides = [1, 1]} : vector<2x64xf32> to vector<2x32xf32>
    %143 = vector.extract_strided_slice %141 {offsets = [0, 32], sizes = [2, 32], strides = [1, 1]} : vector<2x64xf32> to vector<2x32xf32>
    %144 = arith.select %139, %130, %100 : vector<2x64xi1>, vector<2x64xf32>
    %145 = arith.select %139, %128, %101 : vector<2x64xi1>, vector<2x64xf32>
    %146 = vector.extract_strided_slice %5 {offsets = [6, 0], sizes = [2, 256], strides = [1, 1]} : vector<16x256xf32> to vector<2x256xf32>
    %147 = arith.truncf %144 : vector<2x64xf32> to vector<2x64xbf16>
    %cst_27 = arith.constant dense<0.000000e+00> : vector<2x256xf32>
    %148 = tpu.matmul %147, %7, %cst_27 {dimension_numbers = #tpu.dot_dimension_numbers<[1], [0], [0], [1], [0, 0, 1, 1], [], []>} : vector<2x64xbf16>, vector<64x256xbf16>, vector<2x256xf32> -> vector<2x256xf32>
    %149 = arith.addf %146, %148 : vector<2x256xf32>
    %150 = vector.extract_strided_slice %149 {offsets = [0, 0], sizes = [2, 64], strides = [1, 1]} : vector<2x256xf32> to vector<2x64xf32>
    %151 = arith.negf %150 : vector<2x64xf32>
    %152 = math.exp %151 : vector<2x64xf32>
    %cst_28 = arith.constant 1.000000e+00 : f32
    %153 = vector.broadcast %cst_28 : f32 to vector<2x64xf32>
    %154 = arith.addf %153, %152 : vector<2x64xf32>
    %155 = arith.divf %153, %154 : vector<2x64xf32>
    %156 = vector.extract_strided_slice %149 {offsets = [0, 64], sizes = [2, 64], strides = [1, 1]} : vector<2x256xf32> to vector<2x64xf32>
    %157 = arith.negf %156 : vector<2x64xf32>
    %158 = math.exp %157 : vector<2x64xf32>
    %cst_29 = arith.constant 1.000000e+00 : f32
    %159 = vector.broadcast %cst_29 : f32 to vector<2x64xf32>
    %160 = arith.addf %159, %158 : vector<2x64xf32>
    %161 = arith.divf %159, %160 : vector<2x64xf32>
    %162 = vector.extract_strided_slice %149 {offsets = [0, 128], sizes = [2, 64], strides = [1, 1]} : vector<2x256xf32> to vector<2x64xf32>
    %163 = math.tanh %162 : vector<2x64xf32>
    %164 = vector.extract_strided_slice %149 {offsets = [0, 192], sizes = [2, 64], strides = [1, 1]} : vector<2x256xf32> to vector<2x64xf32>
    %165 = arith.negf %164 : vector<2x64xf32>
    %166 = math.exp %165 : vector<2x64xf32>
    %cst_30 = arith.constant 1.000000e+00 : f32
    %167 = vector.broadcast %cst_30 : f32 to vector<2x64xf32>
    %168 = arith.addf %167, %166 : vector<2x64xf32>
    %169 = arith.divf %167, %168 : vector<2x64xf32>
    %170 = arith.mulf %161, %145 : vector<2x64xf32>
    %171 = arith.mulf %155, %163 : vector<2x64xf32>
    %172 = arith.addf %170, %171 : vector<2x64xf32>
    %173 = math.tanh %172 : vector<2x64xf32>
    %174 = arith.mulf %169, %173 : vector<2x64xf32>
    %c3_i32 = arith.constant 3 : i32
    %175 = vector.broadcast %c3_i32 : i32 to vector<2x1xi32>
    %176 = arith.cmpi sgt, %6, %175 : vector<2x1xi32>
    %177 = vector.broadcast %176 : vector<2x1xi1> to vector<2x64xi1>
    %178 = arith.andi %10, %177 : vector<2x64xi1>
    %c4_i32 = arith.constant 4 : i32
    %179 = vector.broadcast %c4_i32 : i32 to vector<2x1xi32>
    %180 = arith.cmpi sgt, %6, %179 : vector<2x1xi32>
    %181 = vector.broadcast %180 : vector<2x1xi1> to vector<2x64xi1>
    %182 = arith.andi %11, %181 : vector<2x64xi1>
    %183 = arith.ori %178, %182 : vector<2x64xi1>
    %cst_31 = arith.constant 0.000000e+00 : f32
    %184 = vector.broadcast %cst_31 : f32 to vector<2x64xf32>
    %185 = arith.select %183, %174, %184 : vector<2x64xi1>, vector<2x64xf32>
    %186 = vector.extract_strided_slice %185 {offsets = [0, 0], sizes = [2, 32], strides = [1, 1]} : vector<2x64xf32> to vector<2x32xf32>
    %187 = vector.extract_strided_slice %185 {offsets = [0, 32], sizes = [2, 32], strides = [1, 1]} : vector<2x64xf32> to vector<2x32xf32>
    %188 = arith.select %183, %174, %144 : vector<2x64xi1>, vector<2x64xf32>
    %189 = arith.select %183, %172, %145 : vector<2x64xi1>, vector<2x64xf32>
    %190 = vector.extract_strided_slice %5 {offsets = [8, 0], sizes = [2, 256], strides = [1, 1]} : vector<16x256xf32> to vector<2x256xf32>
    %191 = arith.truncf %188 : vector<2x64xf32> to vector<2x64xbf16>
    %cst_32 = arith.constant dense<0.000000e+00> : vector<2x256xf32>
    %192 = tpu.matmul %191, %7, %cst_32 {dimension_numbers = #tpu.dot_dimension_numbers<[1], [0], [0], [1], [0, 0, 1, 1], [], []>} : vector<2x64xbf16>, vector<64x256xbf16>, vector<2x256xf32> -> vector<2x256xf32>
    %193 = arith.addf %190, %192 : vector<2x256xf32>
    %194 = vector.extract_strided_slice %193 {offsets = [0, 0], sizes = [2, 64], strides = [1, 1]} : vector<2x256xf32> to vector<2x64xf32>
    %195 = arith.negf %194 : vector<2x64xf32>
    %196 = math.exp %195 : vector<2x64xf32>
    %cst_33 = arith.constant 1.000000e+00 : f32
    %197 = vector.broadcast %cst_33 : f32 to vector<2x64xf32>
    %198 = arith.addf %197, %196 : vector<2x64xf32>
    %199 = arith.divf %197, %198 : vector<2x64xf32>
    %200 = vector.extract_strided_slice %193 {offsets = [0, 64], sizes = [2, 64], strides = [1, 1]} : vector<2x256xf32> to vector<2x64xf32>
    %201 = arith.negf %200 : vector<2x64xf32>
    %202 = math.exp %201 : vector<2x64xf32>
    %cst_34 = arith.constant 1.000000e+00 : f32
    %203 = vector.broadcast %cst_34 : f32 to vector<2x64xf32>
    %204 = arith.addf %203, %202 : vector<2x64xf32>
    %205 = arith.divf %203, %204 : vector<2x64xf32>
    %206 = vector.extract_strided_slice %193 {offsets = [0, 128], sizes = [2, 64], strides = [1, 1]} : vector<2x256xf32> to vector<2x64xf32>
    %207 = math.tanh %206 : vector<2x64xf32>
    %208 = vector.extract_strided_slice %193 {offsets = [0, 192], sizes = [2, 64], strides = [1, 1]} : vector<2x256xf32> to vector<2x64xf32>
    %209 = arith.negf %208 : vector<2x64xf32>
    %210 = math.exp %209 : vector<2x64xf32>
    %cst_35 = arith.constant 1.000000e+00 : f32
    %211 = vector.broadcast %cst_35 : f32 to vector<2x64xf32>
    %212 = arith.addf %211, %210 : vector<2x64xf32>
    %213 = arith.divf %211, %212 : vector<2x64xf32>
    %214 = arith.mulf %205, %189 : vector<2x64xf32>
    %215 = arith.mulf %199, %207 : vector<2x64xf32>
    %216 = arith.addf %214, %215 : vector<2x64xf32>
    %217 = math.tanh %216 : vector<2x64xf32>
    %218 = arith.mulf %213, %217 : vector<2x64xf32>
    %c4_i32_36 = arith.constant 4 : i32
    %219 = vector.broadcast %c4_i32_36 : i32 to vector<2x1xi32>
    %220 = arith.cmpi sgt, %6, %219 : vector<2x1xi32>
    %221 = vector.broadcast %220 : vector<2x1xi1> to vector<2x64xi1>
    %222 = arith.andi %10, %221 : vector<2x64xi1>
    %c3_i32_37 = arith.constant 3 : i32
    %223 = vector.broadcast %c3_i32_37 : i32 to vector<2x1xi32>
    %224 = arith.cmpi sgt, %6, %223 : vector<2x1xi32>
    %225 = vector.broadcast %224 : vector<2x1xi1> to vector<2x64xi1>
    %226 = arith.andi %11, %225 : vector<2x64xi1>
    %227 = arith.ori %222, %226 : vector<2x64xi1>
    %cst_38 = arith.constant 0.000000e+00 : f32
    %228 = vector.broadcast %cst_38 : f32 to vector<2x64xf32>
    %229 = arith.select %227, %218, %228 : vector<2x64xi1>, vector<2x64xf32>
    %230 = vector.extract_strided_slice %229 {offsets = [0, 0], sizes = [2, 32], strides = [1, 1]} : vector<2x64xf32> to vector<2x32xf32>
    %231 = vector.extract_strided_slice %229 {offsets = [0, 32], sizes = [2, 32], strides = [1, 1]} : vector<2x64xf32> to vector<2x32xf32>
    %232 = arith.select %227, %218, %188 : vector<2x64xi1>, vector<2x64xf32>
    %233 = arith.select %227, %216, %189 : vector<2x64xi1>, vector<2x64xf32>
    %234 = vector.extract_strided_slice %5 {offsets = [10, 0], sizes = [2, 256], strides = [1, 1]} : vector<16x256xf32> to vector<2x256xf32>
    %235 = arith.truncf %232 : vector<2x64xf32> to vector<2x64xbf16>
    %cst_39 = arith.constant dense<0.000000e+00> : vector<2x256xf32>
    %236 = tpu.matmul %235, %7, %cst_39 {dimension_numbers = #tpu.dot_dimension_numbers<[1], [0], [0], [1], [0, 0, 1, 1], [], []>} : vector<2x64xbf16>, vector<64x256xbf16>, vector<2x256xf32> -> vector<2x256xf32>
    %237 = arith.addf %234, %236 : vector<2x256xf32>
    %238 = vector.extract_strided_slice %237 {offsets = [0, 0], sizes = [2, 64], strides = [1, 1]} : vector<2x256xf32> to vector<2x64xf32>
    %239 = arith.negf %238 : vector<2x64xf32>
    %240 = math.exp %239 : vector<2x64xf32>
    %cst_40 = arith.constant 1.000000e+00 : f32
    %241 = vector.broadcast %cst_40 : f32 to vector<2x64xf32>
    %242 = arith.addf %241, %240 : vector<2x64xf32>
    %243 = arith.divf %241, %242 : vector<2x64xf32>
    %244 = vector.extract_strided_slice %237 {offsets = [0, 64], sizes = [2, 64], strides = [1, 1]} : vector<2x256xf32> to vector<2x64xf32>
    %245 = arith.negf %244 : vector<2x64xf32>
    %246 = math.exp %245 : vector<2x64xf32>
    %cst_41 = arith.constant 1.000000e+00 : f32
    %247 = vector.broadcast %cst_41 : f32 to vector<2x64xf32>
    %248 = arith.addf %247, %246 : vector<2x64xf32>
    %249 = arith.divf %247, %248 : vector<2x64xf32>
    %250 = vector.extract_strided_slice %237 {offsets = [0, 128], sizes = [2, 64], strides = [1, 1]} : vector<2x256xf32> to vector<2x64xf32>
    %251 = math.tanh %250 : vector<2x64xf32>
    %252 = vector.extract_strided_slice %237 {offsets = [0, 192], sizes = [2, 64], strides = [1, 1]} : vector<2x256xf32> to vector<2x64xf32>
    %253 = arith.negf %252 : vector<2x64xf32>
    %254 = math.exp %253 : vector<2x64xf32>
    %cst_42 = arith.constant 1.000000e+00 : f32
    %255 = vector.broadcast %cst_42 : f32 to vector<2x64xf32>
    %256 = arith.addf %255, %254 : vector<2x64xf32>
    %257 = arith.divf %255, %256 : vector<2x64xf32>
    %258 = arith.mulf %249, %233 : vector<2x64xf32>
    %259 = arith.mulf %243, %251 : vector<2x64xf32>
    %260 = arith.addf %258, %259 : vector<2x64xf32>
    %261 = math.tanh %260 : vector<2x64xf32>
    %262 = arith.mulf %257, %261 : vector<2x64xf32>
    %c5_i32_43 = arith.constant 5 : i32
    %263 = vector.broadcast %c5_i32_43 : i32 to vector<2x1xi32>
    %264 = arith.cmpi sgt, %6, %263 : vector<2x1xi32>
    %265 = vector.broadcast %264 : vector<2x1xi1> to vector<2x64xi1>
    %266 = arith.andi %10, %265 : vector<2x64xi1>
    %c2_i32_44 = arith.constant 2 : i32
    %267 = vector.broadcast %c2_i32_44 : i32 to vector<2x1xi32>
    %268 = arith.cmpi sgt, %6, %267 : vector<2x1xi32>
    %269 = vector.broadcast %268 : vector<2x1xi1> to vector<2x64xi1>
    %270 = arith.andi %11, %269 : vector<2x64xi1>
    %271 = arith.ori %266, %270 : vector<2x64xi1>
    %cst_45 = arith.constant 0.000000e+00 : f32
    %272 = vector.broadcast %cst_45 : f32 to vector<2x64xf32>
    %273 = arith.select %271, %262, %272 : vector<2x64xi1>, vector<2x64xf32>
    %274 = vector.extract_strided_slice %273 {offsets = [0, 0], sizes = [2, 32], strides = [1, 1]} : vector<2x64xf32> to vector<2x32xf32>
    %275 = vector.extract_strided_slice %273 {offsets = [0, 32], sizes = [2, 32], strides = [1, 1]} : vector<2x64xf32> to vector<2x32xf32>
    %276 = arith.select %271, %262, %232 : vector<2x64xi1>, vector<2x64xf32>
    %277 = arith.select %271, %260, %233 : vector<2x64xi1>, vector<2x64xf32>
    %278 = vector.extract_strided_slice %5 {offsets = [12, 0], sizes = [2, 256], strides = [1, 1]} : vector<16x256xf32> to vector<2x256xf32>
    %279 = arith.truncf %276 : vector<2x64xf32> to vector<2x64xbf16>
    %cst_46 = arith.constant dense<0.000000e+00> : vector<2x256xf32>
    %280 = tpu.matmul %279, %7, %cst_46 {dimension_numbers = #tpu.dot_dimension_numbers<[1], [0], [0], [1], [0, 0, 1, 1], [], []>} : vector<2x64xbf16>, vector<64x256xbf16>, vector<2x256xf32> -> vector<2x256xf32>
    %281 = arith.addf %278, %280 : vector<2x256xf32>
    %282 = vector.extract_strided_slice %281 {offsets = [0, 0], sizes = [2, 64], strides = [1, 1]} : vector<2x256xf32> to vector<2x64xf32>
    %283 = arith.negf %282 : vector<2x64xf32>
    %284 = math.exp %283 : vector<2x64xf32>
    %cst_47 = arith.constant 1.000000e+00 : f32
    %285 = vector.broadcast %cst_47 : f32 to vector<2x64xf32>
    %286 = arith.addf %285, %284 : vector<2x64xf32>
    %287 = arith.divf %285, %286 : vector<2x64xf32>
    %288 = vector.extract_strided_slice %281 {offsets = [0, 64], sizes = [2, 64], strides = [1, 1]} : vector<2x256xf32> to vector<2x64xf32>
    %289 = arith.negf %288 : vector<2x64xf32>
    %290 = math.exp %289 : vector<2x64xf32>
    %cst_48 = arith.constant 1.000000e+00 : f32
    %291 = vector.broadcast %cst_48 : f32 to vector<2x64xf32>
    %292 = arith.addf %291, %290 : vector<2x64xf32>
    %293 = arith.divf %291, %292 : vector<2x64xf32>
    %294 = vector.extract_strided_slice %281 {offsets = [0, 128], sizes = [2, 64], strides = [1, 1]} : vector<2x256xf32> to vector<2x64xf32>
    %295 = math.tanh %294 : vector<2x64xf32>
    %296 = vector.extract_strided_slice %281 {offsets = [0, 192], sizes = [2, 64], strides = [1, 1]} : vector<2x256xf32> to vector<2x64xf32>
    %297 = arith.negf %296 : vector<2x64xf32>
    %298 = math.exp %297 : vector<2x64xf32>
    %cst_49 = arith.constant 1.000000e+00 : f32
    %299 = vector.broadcast %cst_49 : f32 to vector<2x64xf32>
    %300 = arith.addf %299, %298 : vector<2x64xf32>
    %301 = arith.divf %299, %300 : vector<2x64xf32>
    %302 = arith.mulf %293, %277 : vector<2x64xf32>
    %303 = arith.mulf %287, %295 : vector<2x64xf32>
    %304 = arith.addf %302, %303 : vector<2x64xf32>
    %305 = math.tanh %304 : vector<2x64xf32>
    %306 = arith.mulf %301, %305 : vector<2x64xf32>
    %c6_i32_50 = arith.constant 6 : i32
    %307 = vector.broadcast %c6_i32_50 : i32 to vector<2x1xi32>
    %308 = arith.cmpi sgt, %6, %307 : vector<2x1xi32>
    %309 = vector.broadcast %308 : vector<2x1xi1> to vector<2x64xi1>
    %310 = arith.andi %10, %309 : vector<2x64xi1>
    %c1_i32_51 = arith.constant 1 : i32
    %311 = vector.broadcast %c1_i32_51 : i32 to vector<2x1xi32>
    %312 = arith.cmpi sgt, %6, %311 : vector<2x1xi32>
    %313 = vector.broadcast %312 : vector<2x1xi1> to vector<2x64xi1>
    %314 = arith.andi %11, %313 : vector<2x64xi1>
    %315 = arith.ori %310, %314 : vector<2x64xi1>
    %cst_52 = arith.constant 0.000000e+00 : f32
    %316 = vector.broadcast %cst_52 : f32 to vector<2x64xf32>
    %317 = arith.select %315, %306, %316 : vector<2x64xi1>, vector<2x64xf32>
    %318 = vector.extract_strided_slice %317 {offsets = [0, 0], sizes = [2, 32], strides = [1, 1]} : vector<2x64xf32> to vector<2x32xf32>
    %319 = vector.extract_strided_slice %317 {offsets = [0, 32], sizes = [2, 32], strides = [1, 1]} : vector<2x64xf32> to vector<2x32xf32>
    %320 = arith.select %315, %306, %276 : vector<2x64xi1>, vector<2x64xf32>
    %321 = arith.select %315, %304, %277 : vector<2x64xi1>, vector<2x64xf32>
    %322 = vector.extract_strided_slice %5 {offsets = [14, 0], sizes = [2, 256], strides = [1, 1]} : vector<16x256xf32> to vector<2x256xf32>
    %323 = arith.truncf %320 : vector<2x64xf32> to vector<2x64xbf16>
    %cst_53 = arith.constant dense<0.000000e+00> : vector<2x256xf32>
    %324 = tpu.matmul %323, %7, %cst_53 {dimension_numbers = #tpu.dot_dimension_numbers<[1], [0], [0], [1], [0, 0, 1, 1], [], []>} : vector<2x64xbf16>, vector<64x256xbf16>, vector<2x256xf32> -> vector<2x256xf32>
    %325 = arith.addf %322, %324 : vector<2x256xf32>
    %326 = vector.extract_strided_slice %325 {offsets = [0, 0], sizes = [2, 64], strides = [1, 1]} : vector<2x256xf32> to vector<2x64xf32>
    %327 = arith.negf %326 : vector<2x64xf32>
    %328 = math.exp %327 : vector<2x64xf32>
    %cst_54 = arith.constant 1.000000e+00 : f32
    %329 = vector.broadcast %cst_54 : f32 to vector<2x64xf32>
    %330 = arith.addf %329, %328 : vector<2x64xf32>
    %331 = arith.divf %329, %330 : vector<2x64xf32>
    %332 = vector.extract_strided_slice %325 {offsets = [0, 64], sizes = [2, 64], strides = [1, 1]} : vector<2x256xf32> to vector<2x64xf32>
    %333 = arith.negf %332 : vector<2x64xf32>
    %334 = math.exp %333 : vector<2x64xf32>
    %cst_55 = arith.constant 1.000000e+00 : f32
    %335 = vector.broadcast %cst_55 : f32 to vector<2x64xf32>
    %336 = arith.addf %335, %334 : vector<2x64xf32>
    %337 = arith.divf %335, %336 : vector<2x64xf32>
    %338 = vector.extract_strided_slice %325 {offsets = [0, 128], sizes = [2, 64], strides = [1, 1]} : vector<2x256xf32> to vector<2x64xf32>
    %339 = math.tanh %338 : vector<2x64xf32>
    %340 = vector.extract_strided_slice %325 {offsets = [0, 192], sizes = [2, 64], strides = [1, 1]} : vector<2x256xf32> to vector<2x64xf32>
    %341 = arith.negf %340 : vector<2x64xf32>
    %342 = math.exp %341 : vector<2x64xf32>
    %cst_56 = arith.constant 1.000000e+00 : f32
    %343 = vector.broadcast %cst_56 : f32 to vector<2x64xf32>
    %344 = arith.addf %343, %342 : vector<2x64xf32>
    %345 = arith.divf %343, %344 : vector<2x64xf32>
    %346 = arith.mulf %337, %321 : vector<2x64xf32>
    %347 = arith.mulf %331, %339 : vector<2x64xf32>
    %348 = arith.addf %346, %347 : vector<2x64xf32>
    %349 = math.tanh %348 : vector<2x64xf32>
    %350 = arith.mulf %345, %349 : vector<2x64xf32>
    %c7_i32_57 = arith.constant 7 : i32
    %351 = vector.broadcast %c7_i32_57 : i32 to vector<2x1xi32>
    %352 = arith.cmpi sgt, %6, %351 : vector<2x1xi32>
    %353 = vector.broadcast %352 : vector<2x1xi1> to vector<2x64xi1>
    %354 = arith.andi %10, %353 : vector<2x64xi1>
    %c0_i32_58 = arith.constant 0 : i32
    %355 = vector.broadcast %c0_i32_58 : i32 to vector<2x1xi32>
    %356 = arith.cmpi sgt, %6, %355 : vector<2x1xi32>
    %357 = vector.broadcast %356 : vector<2x1xi1> to vector<2x64xi1>
    %358 = arith.andi %11, %357 : vector<2x64xi1>
    %359 = arith.ori %354, %358 : vector<2x64xi1>
    %cst_59 = arith.constant 0.000000e+00 : f32
    %360 = vector.broadcast %cst_59 : f32 to vector<2x64xf32>
    %361 = arith.select %359, %350, %360 : vector<2x64xi1>, vector<2x64xf32>
    %362 = vector.extract_strided_slice %361 {offsets = [0, 0], sizes = [2, 32], strides = [1, 1]} : vector<2x64xf32> to vector<2x32xf32>
    %363 = vector.extract_strided_slice %361 {offsets = [0, 32], sizes = [2, 32], strides = [1, 1]} : vector<2x64xf32> to vector<2x32xf32>
    %364 = tpu.concatenate %54, %98, %142, %186, %230, %274, %318, %362 in 0 : vector<2x32xf32>, vector<2x32xf32>, vector<2x32xf32>, vector<2x32xf32>, vector<2x32xf32>, vector<2x32xf32>, vector<2x32xf32>, vector<2x32xf32> -> vector<16x32xf32>
    %365 = tpu.concatenate %363, %319, %275, %231, %187, %143, %99, %55 in 0 : vector<2x32xf32>, vector<2x32xf32>, vector<2x32xf32>, vector<2x32xf32>, vector<2x32xf32>, vector<2x32xf32>, vector<2x32xf32>, vector<2x32xf32> -> vector<16x32xf32>
    %366 = tpu.concatenate %364, %365 in 1 : vector<16x32xf32>, vector<16x32xf32> -> vector<16x64xf32>
    %367 = arith.truncf %366 : vector<16x64xf32> to vector<16x64xbf16>
    %c0_60 = arith.constant 0 : index
    %c0_61 = arith.constant 0 : index
    %368 = vector.load %arg6[%c0_60, %c0_61] : memref<64x200xbf16, #tpu.memory_space<vmem>>, vector<64x200xbf16>
    %cst_62 = arith.constant dense<0.000000e+00> : vector<16x200xf32>
    %369 = tpu.matmul %367, %368, %cst_62 {dimension_numbers = #tpu.dot_dimension_numbers<[1], [0], [0], [1], [0, 0, 1, 1], [], []>} : vector<16x64xbf16>, vector<64x200xbf16>, vector<16x200xf32> -> vector<16x200xf32>
    %c0_63 = arith.constant 0 : index
    %c0_64 = arith.constant 0 : index
    %370 = vector.load %arg7[%c0_63, %c0_64] : memref<1x200xf32, #tpu.memory_space<vmem>>, vector<1x200xf32>
    %371 = vector.broadcast %370 : vector<1x200xf32> to vector<16x200xf32>
    %372 = arith.addf %369, %371 : vector<16x200xf32>
    %373 = math.tanh %372 : vector<16x200xf32>
    %374 = arith.truncf %373 : vector<16x200xf32> to vector<16x200xbf16>
    %c0_65 = arith.constant 0 : index
    %c0_66 = arith.constant 0 : index
    %375 = vector.load %arg8[%c0_65, %c0_66] : memref<200x20xbf16, #tpu.memory_space<vmem>>, vector<200x20xbf16>
    %cst_67 = arith.constant dense<0.000000e+00> : vector<16x20xf32>
    %376 = tpu.matmul %374, %375, %cst_67 {dimension_numbers = #tpu.dot_dimension_numbers<[1], [0], [0], [1], [0, 0, 1, 1], [], []>} : vector<16x200xbf16>, vector<200x20xbf16>, vector<16x20xf32> -> vector<16x20xf32>
    %c0_68 = arith.constant 0 : index
    %c0_69 = arith.constant 0 : index
    %377 = vector.load %arg9[%c0_68, %c0_69] : memref<1x20xf32, #tpu.memory_space<vmem>>, vector<1x20xf32>
    %378 = vector.broadcast %377 : vector<1x20xf32> to vector<16x20xf32>
    %379 = arith.addf %376, %378 : vector<16x20xf32>
    %c0_70 = arith.constant 0 : index
    %c0_71 = arith.constant 0 : index
    %380 = vector.load %arg2[%c0_70, %c0_71] : memref<16x1xi32, #tpu.memory_space<vmem>>, vector<16x1xi32>
    %c0_72 = arith.constant 0 : index
    %c0_73 = arith.constant 0 : index
    %381 = vector.load %arg10[%c0_72, %c0_73] : memref<20x64xf32, #tpu.memory_space<vmem>>, vector<20x64xf32>
    %cst_74 = arith.constant 0.000000e+00 : f32
    %382 = vector.broadcast %cst_74 : f32 to vector<16x20xf32>
    %c0_i32_75 = arith.constant 0 : i32
    %383 = vector.broadcast %c0_i32_75 : i32 to vector<16x1xi32>
    %384 = arith.cmpi eq, %380, %383 : vector<16x1xi32>
    %cst_76 = arith.constant -1.000000e+30 : f32
    %385 = vector.shape_cast %384 : vector<16x1xi1> to vector<16x1xi1>
    %386 = vector.broadcast %385 : vector<16x1xi1> to vector<16x20xi1>
    %387 = vector.broadcast %cst_76 : f32 to vector<16x20xf32>
    %388 = arith.select %386, %379, %387 : vector<16x20xi1>, vector<16x20xf32>
    %cst_77 = arith.constant dense<0xFF800000> : vector<20xf32>
    %389 = vector.multi_reduction <maximumf>, %388, %cst_77 [0] : vector<16x20xf32> to vector<20xf32>
    %390 = vector.shape_cast %389 : vector<20xf32> to vector<1x20xf32>
    %391 = vector.broadcast %390 : vector<1x20xf32> to vector<16x20xf32>
    %392 = arith.subf %379, %391 : vector<16x20xf32>
    %393 = math.exp %392 : vector<16x20xf32>
    %cst_78 = arith.constant 0.000000e+00 : f32
    %394 = vector.shape_cast %384 : vector<16x1xi1> to vector<16x1xi1>
    %395 = vector.broadcast %394 : vector<16x1xi1> to vector<16x20xi1>
    %396 = vector.broadcast %cst_78 : f32 to vector<16x20xf32>
    %397 = arith.select %395, %393, %396 : vector<16x20xi1>, vector<16x20xf32>
    %cst_79 = arith.constant dense<0.000000e+00> : vector<20xf32>
    %398 = vector.multi_reduction <add>, %397, %cst_79 [0] : vector<16x20xf32> to vector<20xf32>
    %399 = vector.shape_cast %398 : vector<20xf32> to vector<1x20xf32>
    %400 = tpu.reciprocal %399 {approx = true} : vector<1x20xf32> -> vector<1x20xf32>
    %401 = vector.broadcast %400 : vector<1x20xf32> to vector<16x20xf32>
    %402 = arith.mulf %397, %401 : vector<16x20xf32>
    %403 = arith.addf %382, %402 : vector<16x20xf32>
    %404 = arith.truncf %402 : vector<16x20xf32> to vector<16x20xbf16>
    %cst_80 = arith.constant dense<0.000000e+00> : vector<20x64xf32>
    %405 = tpu.matmul %404, %367, %cst_80 {dimension_numbers = #tpu.dot_dimension_numbers<[0], [0], [1], [1], [0, 1, 1, 1], [], []>} : vector<16x20xbf16>, vector<16x64xbf16>, vector<20x64xf32> -> vector<20x64xf32>
    %406 = arith.mulf %405, %381 : vector<20x64xf32>
    %407 = vector.shape_cast %406 : vector<20x64xf32> to vector<1x20x64xf32>
    %cst_81 = arith.constant dense<0.000000e+00> : vector<1xf32>
    %408 = vector.multi_reduction <add>, %407, %cst_81 [1, 2] : vector<1x20x64xf32> to vector<1xf32>
    %409 = vector.shape_cast %408 : vector<1xf32> to vector<1x1x1xf32>
    %410 = vector.extract %409[0, 0, 0] : f32 from vector<1x1x1xf32>
    %411 = vector.broadcast %410 : f32 to vector<1x1xf32>
    %c1_i32_82 = arith.constant 1 : i32
    %412 = vector.broadcast %c1_i32_82 : i32 to vector<16x1xi32>
    %413 = arith.cmpi eq, %380, %412 : vector<16x1xi32>
    %cst_83 = arith.constant -1.000000e+30 : f32
    %414 = vector.shape_cast %413 : vector<16x1xi1> to vector<16x1xi1>
    %415 = vector.broadcast %414 : vector<16x1xi1> to vector<16x20xi1>
    %416 = vector.broadcast %cst_83 : f32 to vector<16x20xf32>
    %417 = arith.select %415, %379, %416 : vector<16x20xi1>, vector<16x20xf32>
    %cst_84 = arith.constant dense<0xFF800000> : vector<20xf32>
    %418 = vector.multi_reduction <maximumf>, %417, %cst_84 [0] : vector<16x20xf32> to vector<20xf32>
    %419 = vector.shape_cast %418 : vector<20xf32> to vector<1x20xf32>
    %420 = vector.broadcast %419 : vector<1x20xf32> to vector<16x20xf32>
    %421 = arith.subf %379, %420 : vector<16x20xf32>
    %422 = math.exp %421 : vector<16x20xf32>
    %cst_85 = arith.constant 0.000000e+00 : f32
    %423 = vector.shape_cast %413 : vector<16x1xi1> to vector<16x1xi1>
    %424 = vector.broadcast %423 : vector<16x1xi1> to vector<16x20xi1>
    %425 = vector.broadcast %cst_85 : f32 to vector<16x20xf32>
    %426 = arith.select %424, %422, %425 : vector<16x20xi1>, vector<16x20xf32>
    %cst_86 = arith.constant dense<0.000000e+00> : vector<20xf32>
    %427 = vector.multi_reduction <add>, %426, %cst_86 [0] : vector<16x20xf32> to vector<20xf32>
    %428 = vector.shape_cast %427 : vector<20xf32> to vector<1x20xf32>
    %429 = tpu.reciprocal %428 {approx = true} : vector<1x20xf32> -> vector<1x20xf32>
    %430 = vector.broadcast %429 : vector<1x20xf32> to vector<16x20xf32>
    %431 = arith.mulf %426, %430 : vector<16x20xf32>
    %432 = arith.addf %403, %431 : vector<16x20xf32>
    %433 = arith.truncf %431 : vector<16x20xf32> to vector<16x20xbf16>
    %cst_87 = arith.constant dense<0.000000e+00> : vector<20x64xf32>
    %434 = tpu.matmul %433, %367, %cst_87 {dimension_numbers = #tpu.dot_dimension_numbers<[0], [0], [1], [1], [0, 1, 1, 1], [], []>} : vector<16x20xbf16>, vector<16x64xbf16>, vector<20x64xf32> -> vector<20x64xf32>
    %435 = arith.mulf %434, %381 : vector<20x64xf32>
    %436 = vector.shape_cast %435 : vector<20x64xf32> to vector<1x20x64xf32>
    %cst_88 = arith.constant dense<0.000000e+00> : vector<1xf32>
    %437 = vector.multi_reduction <add>, %436, %cst_88 [1, 2] : vector<1x20x64xf32> to vector<1xf32>
    %438 = vector.shape_cast %437 : vector<1xf32> to vector<1x1x1xf32>
    %439 = vector.extract %438[0, 0, 0] : f32 from vector<1x1x1xf32>
    %440 = vector.broadcast %439 : f32 to vector<1x1xf32>
    %c0_89 = arith.constant 0 : index
    %c0_90 = arith.constant 0 : index
    %441 = vector.load %arg13[%c0_89, %c0_90] : memref<16x20xf32, #tpu.memory_space<vmem>>, vector<16x20xf32>
    tpu.vector_store %arg13[%c0_89, %c0_90], %432 {strides = array<i32>} : memref<16x20xf32, #tpu.memory_space<vmem>>, vector<16x20xf32>,
    %442 = tpu.concatenate %411, %440 in 0 : vector<1x1xf32>, vector<1x1xf32> -> vector<2x1xf32>
    %c0_91 = arith.constant 0 : index
    %c0_92 = arith.constant 0 : index
    %443 = vector.load %arg11[%c0_91, %c0_92] : memref<1x1xf32, #tpu.memory_space<vmem>>, vector<1x1xf32>
    %444 = vector.broadcast %443 : vector<1x1xf32> to vector<2x1xf32>
    %445 = arith.addf %442, %444 : vector<2x1xf32>
    %c0_93 = arith.constant 0 : index
    %c0_94 = arith.constant 0 : index
    %446 = vector.load %arg12[%c0_93, %c0_94] : memref<2x1xf32, #tpu.memory_space<vmem>>, vector<2x1xf32>
    tpu.vector_store %arg12[%c0_93, %c0_94], %445 {strides = array<i32>} : memref<2x1xf32, #tpu.memory_space<vmem>>, vector<2x1xf32>,
    return
  }
}

</mosaic_0001>

<bundles_post_ra>
// kernel: tile.0
= control target key start
LH: loop header
LB: loop body
LE: loop exit
PB: predicated region body
PF: predicated region fallthrough
CT: control target
= control target key end

     0   :  { %vm3_vm0 = vcmask 7168   ;;  %s13_s9 = smov 127   ;;  %s33_s0 = inlined_call_operand.vmem [shape: s32[8,2], index: 0, kind: input, shape index: {}]   ;;  %s34_s1 = inlined_call_operand.vmem [shape: s32[16,1], index: 1, kind: output, shape index: {}]  }
   0x1   :  { %v2_v0 = vld [vmem:[%s33_s0] sm:$0xff]  }
   0x2   :  { %4 = vst.msk [vmem:[%s34_s1] ss:$2 sm:$0xff] %vm3_vm0, %v2_v0   ;;  %6 = vrot.lane.b32.xlu0 %v2_v0, %s13_s9 }
  0x74   :  { %v7_v1 = vpop.permute.xlu0 %6  }
  0x75   :  { %11 = vst.msk [vmem:[%s34_s1 + $0x1] ss:$2 sm:$0xff] %vm3_vm0, %v7_v1  }

// kernel: forward.1
= control target key start
LH: loop header
LB: loop body
LE: loop exit
PB: predicated region body
PF: predicated region fallthrough
CT: control target
= control target key end

     0   :  { %v1894_v3 = vmov 0   ;;  %vm2652_vm0 = vcmask 261120   ;;  %vm1896_vm13 = vmmov 1   ;;  %s2638_s3 = inlined_call_operand.vmem [shape: bf16[32,256], index: 3, kind: input, shape index: {}]   ;;  %s2639_s5 = inlined_call_operand.vmem [shape: bf16[64,256], index: 5, kind: input, shape index: {}]   ;;  %s2640_s0 = inlined_call_operand.vmem [shape: bf16[16,32], index: 0, kind: input, shape index: {}]   ;;  %s2641_s4 = inlined_call_operand.vmem [shape: f32[1,256], index: 4, kind: input, shape index: {}]   ;;  %s2642_s1 = inlined_call_operand.vmem [shape: s32[2,1], index: 1, kind: input, shape index: {}]   ;;  %s2643_s2 = inlined_call_operand.vmem [shape: s32[16,1], index: 2, kind: input, shape index: {}]   ;;  %s2644_s6 = inlined_call_operand.vmem [shape: bf16[64,200], index: 6, kind: input, shape index: {}]   ;;  %s2645_s8 = inlined_call_operand.vmem [shape: bf16[200,20], index: 8, kind: input, shape index: {}]   ;;  %s2646_s9 = inlined_call_operand.vmem [shape: f32[1,20], index: 9, kind: input, shape index: {}]   ;;  %s2647_s7 = inlined_call_operand.vmem [shape: f32[1,200], index: 7, kind: input, shape index: {}]   ;;  %s2648_s13 = inlined_call_operand.vmem [shape: f32[16,20], index: 13, kind: output, shape index: {1}]   ;;  %s2649_s10 = inlined_call_operand.vmem [shape: f32[20,64], index: 10, kind: input, shape index: {}]   ;;  %s2650_s11 = inlined_call_operand.<no memory space> [shape: f32[1,1], index: 11, kind: input, shape index: {}]   ;;  %s2651_s12 = inlined_call_operand.vmem [shape: f32[2,1], index: 12, kind: output, shape index: {0}]  }
   0x1   :  { %v1731_v0 = vld [vmem:[%s2638_s3 + $0x14] sm:$0xf]  ;;  %v1573_v1 = vld [vmem:[%s2638_s3 + $0x18] sm:$0xf0]  ;;  %1769 = vset.pattern.permute.xlu1 %v1894_v3  ;;  %1768 = vset.pattern.permute.xlu0 %v1894_v3  ;;  %v1729_v6 = vld [vmem:[%s2638_s3 + $0x4] sm:$0xf] }
   0x2   :  { %v1739_v2 = vld [vmem:[%s2639_s5 + $0x34] sm:$0xf]  ;;  %v1576_v4 = vor.u32 %v1731_v0, %v1573_v1  ;;  %v1607_v5 = vld [vmem:[%s2639_s5 + $0x38] sm:$0xf0]  ;;  %v1565_v7 = vld [vmem:[%s2638_s3 + $0x8] sm:$0xf0]  ;;  %1770 = vset.pattern.permute.xlu2 %v1894_v3 }
   0x3   :  { %v1988_v8 = vor.u32 %v1739_v2, %v1607_v5  ;;  %v1737_v9 = vld [vmem:[%s2639_s5 + $0x24] sm:$0xf]  ;;  %v1599_v10 = vld [vmem:[%s2639_s5 + $0x28] sm:$0xf0]  ;;  %v1571_v11 = vld [vmem:[%s2638_s3 + $0x10] sm:$0xf]  ;;  %v1568_v12 = vor.u32 %v1729_v6, %v1565_v7 }
   0x4   :  { %107 = vmatpush.bf16.msra.mxu1 %v1576_v4  ;;  %v1732_v13 = vld [vmem:[%s2638_s3 + $0x14] sm:$0xf0]  ;;  %v1605_v14 = vld [vmem:[%s2639_s5 + $0x30] sm:$0xf]  ;;  %v2006_v15 = vor.u32 %v1737_v9, %v1599_v10  ;;  %v1735_v18 = vld [vmem:[%s2639_s5 + $0x14] sm:$0xf] }
   0x5   :  { %189 = vmatpush.bf16.msra.mxu3 %v1988_v8  ;;  %v1572_v16 = vor.u32 %v1732_v13, %v1571_v11  ;;  %v1740_v17 = vld [vmem:[%s2639_s5 + $0x34] sm:$0xf0]  ;;  %v1591_v19 = vld [vmem:[%s2639_s5 + $0x18] sm:$0xf0]  ;;  %v1563_v21 = vld [vmem:[%s2638_s3] sm:$0xf] }
   0x6   :  { %v2017_v20 = vor.u32 %v1740_v17, %v1605_v14  ;;  %v1730_v22 = vld [vmem:[%s2638_s3 + $0x4] sm:$0xf0]  ;;  %v1597_v23 = vld [vmem:[%s2639_s5 + $0x20] sm:$0xf]  ;;  %v2037_v27 = vor.u32 %v1735_v18, %v1591_v19  ;;  %v1733_v29 = vld [vmem:[%s2639_s5 + $0x4] sm:$0xf] }
   0x7   :  { %93 = vmatpush.bf16.msra.mxu0 %v1572_v16  ;;  %v1728_v24 = vld [vmem:[%s2640_s0] sm:$0xff]  ;;  %v1564_v25 = vor.u32 %v1730_v22, %v1563_v21  ;;  %v1738_v26 = vld [vmem:[%s2639_s5 + $0x24] sm:$0xf0]  ;;  %v1583_v30 = vld [vmem:[%s2639_s5 + $0x8] sm:$0xf0] }
   0x8   :  { %108 = vmatpush.bf16.msra.mxu1 %v1568_v12  ;;  %400 = vmatpush.bf16.msra.mxu2 %v2017_v20  ;;  %v2039_v28 = vor.u32 %v1738_v26, %v1597_v23  ;;  %v1589_v31 = vld [vmem:[%s2639_s5 + $0x10] sm:$0xf]  ;;  %v1736_v32 = vld [vmem:[%s2639_s5 + $0x14] sm:$0xf0]  ;;  %v2058_v33 = vor.u32 %v1733_v29, %v1583_v30  ;;  %v1581_v35 = vld [vmem:[%s2639_s5] sm:$0xf] }
   0x9   :  { %190 = vmatpush.bf16.msra.mxu3 %v2006_v15  ;;  %v2060_v34 = vor.u32 %v1736_v32, %v1589_v31  ;;  %v1734_v36 = vld [vmem:[%s2639_s5 + $0x4] sm:$0xf0]  ;;  %v2108_v39 = vld [vmem:[%s2641_s4] sm:$0x3]  ;;  %v124_v32 = vlaneseq }
   0xa   :  { %v2073_v37 = vor.u32 %v1734_v36, %v1581_v35  ;;  %v55_v40 = vperm.slane %v2108_v39, 1  ;;  %v54_v42 = vperm.slane %v2108_v39, 0  ;;  %v2122_v49 = vld [vmem:[%s2642_s1] sm:$0x3]  ;;  %s1895_s1 = smov 64  }
   0xb   :  { %1578 = vmatmul.msk.bf16.vlgmr.msra.gmra.mxu1 %vm2652_vm0, %v1728_v24  ;;  %94 = vmatpush.bf16.msra.mxu0 %v1564_v25  ;;  %vm255_vm1 = vcmp.gt.s32.totalorder %v2122_v49, 7  ;;  %vm248_vm6 = vcmp.gt.s32.totalorder %v2122_v49, 0  ;;  %vm371_vm7 = vcmp.gt.s32.totalorder %v2122_v49, 6  ;;  %v2136_v35 = vand.u32 127, %v124_v32 }
   0xc   :  { %176 = vmatpush.bf16.msrb.mxu1 %v2017_v20  ;;  %401 = vmatpush.bf16.msra.mxu2 %v2039_v28  ;;  %v256_v51 = vsel %vm255_vm1, 1, %v1894_v3  ;;  %v249_v7 = vsel %vm248_vm6, 1, %v1894_v3  ;;  %v372_v10 = vsel %vm371_vm7, 1, %v1894_v3 }
   0xd   :  { %191 = vmatpush.bf16.msra.mxu3 %v2037_v27  ;;  %258 = vperm.xlu1 %1769, %v256_v51   ;;  %vm126_vm12 = vcmp.lt.s32.totalorder %v2136_v35, 32 }
   0xe   :  { %1577 = vmatmul.msk.bf16.vlgmr.msra.gmra.mxu0 %vm2652_vm0, %v1728_v24  ;;  %vm2141_vm14 = vmxor %vm126_vm12, %vm1896_vm13 }
   0xf   :  { %281 = vmatpush.bf16.msrb.mxu0 %v2017_v20 }
  0x10   :  { %177 = vmatpush.bf16.msrb.mxu1 %v2039_v28  ;;  %402 = vmatpush.bf16.msra.mxu2 %v2060_v34 }
  0x11   :  { %192 = vmatpush.bf16.msra.mxu3 %v2058_v33 }
  0x13   :  { %282 = vmatpush.bf16.msrb.mxu0 %v2039_v28 }
  0x14   :  { %178 = vmatpush.bf16.msrb.mxu1 %v2060_v34  ;;  %193 = vmatmul.bf16.vlgmr.msra.gmra.mxu3 %v1894_v3 }
  0x15   :  { %413 = vmatpush.bf16.msrb.mxu3 %v1988_v8  ;;  %403 = vmatpush.bf16.msra.mxu2 %v2073_v37 }
  0x17   :  { %283 = vmatpush.bf16.msrb.mxu0 %v2060_v34 }
  0x18   :  { %179 = vmatpush.bf16.msrb.mxu1 %v2073_v37 }
  0x19   :  { %414 = vmatpush.bf16.msrb.mxu3 %v2006_v15  ;;  %638 = vmatpush.bf16.msrb.mxu2 %v2017_v20 }
  0x1b   :  { %284 = vmatpush.bf16.msrb.mxu0 %v2073_v37  ;;  %180 = vmatmul.bf16.vlgmr.msrb.gmra.mxu1 %v1894_v3 }
  0x1c   :  { %294 = vmatpush.bf16.msra.mxu1 %v1988_v8 }
  0x1d   :  { %415 = vmatpush.bf16.msrb.mxu3 %v2037_v27  ;;  %639 = vmatpush.bf16.msrb.mxu2 %v2039_v28 }
  0x1f   :  { %519 = vmatpush.bf16.msra.mxu0 %v2017_v20 }
  0x20   :  { %295 = vmatpush.bf16.msra.mxu1 %v2006_v15 }
  0x21   :  { %416 = vmatpush.bf16.msrb.mxu3 %v2058_v33  ;;  %640 = vmatpush.bf16.msrb.mxu2 %v2060_v34 }
  0x23   :  { %520 = vmatpush.bf16.msra.mxu0 %v2039_v28 }
  0x24   :  { %296 = vmatpush.bf16.msra.mxu1 %v2037_v27 }
  0x25   :  { %651 = vmatpush.bf16.msra.mxu3 %v1988_v8  ;;  %641 = vmatpush.bf16.msrb.mxu2 %v2073_v37 }
  0x27   :  { %521 = vmatpush.bf16.msra.mxu0 %v2060_v34 }
  0x28   :  { %297 = vmatpush.bf16.msra.mxu1 %v2058_v33 }
  0x29   :  { %652 = vmatpush.bf16.msra.mxu3 %v2006_v15 }
  0x2b   :  { %522 = vmatpush.bf16.msra.mxu0 %v2073_v37 }
  0x2c   :  { %532 = vmatpush.bf16.msrb.mxu1 %v1988_v8 }
  0x2d   :  { %653 = vmatpush.bf16.msra.mxu3 %v2037_v27 }
  0x30   :  { %533 = vmatpush.bf16.msrb.mxu1 %v2006_v15 }
  0x31   :  { %654 = vmatpush.bf16.msra.mxu3 %v2058_v33 }
  0x34   :  { %534 = vmatpush.bf16.msrb.mxu1 %v2037_v27 }
  0x38   :  { %535 = vmatpush.bf16.msrb.mxu1 %v2058_v33 }
  0x7f   :  { %v259_v36 = vpop.permute.xlu1 %258 }
  0x80   :  { %vm260_vm15 = vcmp.eq.s32.totalorder %v259_v36, 1 }
  0x88   :  { %v110_v38 = vpop.f32.mrf.mxu1 }
  0x89   :  { %v2126_v56 = vadd.f32 %v110_v38, %v55_v40 }
  0x8b   :  { %v96_v44 = vpop.f32.mrf.mxu0 }
  0x8c   :  { %v2116_v45 = vadd.f32 %v96_v44, %v54_v42 }
  0x90   :  { %v112_v41 = vpop.f32.mrf.mxu1 }
  0x91   :  { %v2112_v43 = vadd.f32 %v112_v41, %v55_v40 }
  0x97   :  { %v194_v46 = vpop.f32.mrf.mxu3 }
  0x98   :  { %v181_v47 = vpop.f32.mrf.mxu1  ;;  %v199_v58 = vadd.f32 %v194_v46, %v2126_v56 }
  0x99   :  { %v198_v48 = vadd.f32 %v181_v47, %v2116_v45 }
  0x9a   :  { %v1612_v9 = vmul.f32 -1.442695, %v199_v58 }
  0x9b   :  { %v1611_v50 = vmul.f32 -1.442695, %v198_v48 }
  0x9d   :  { %1778 = vpow2.f32 %v1611_v50 }
  0x9f   :  { %v196_v52 = vpop.f32.mrf.mxu3 }
  0xa0   :  { %v183_v53 = vpop.f32.mrf.mxu1 }
  0xa3   :  { %v1779_v54 = vpop.eup %1778 }
  0xa4   :  { %v203_v55 = vadd.f32 1.0, %v1779_v54 }
  0xa6   :  { %1780 = vrcp.f32 %v203_v55  ;;  %v215_v61 = vand.u32 2147483648, %v203_v55  ;;  %v213_v63 = vand.u32 2147483647, %v203_v55  ;;  %vm209_vm3 = vweird.f32 %v203_v55 }
  0xa7   :  { %1782 = vtanh.f32 %v199_v58 }
  0xa8   :  { %v216_v1 = vor.u32 1.1754944e-38, %v215_v61  ;;  %vm214_vm5 = vcmp.eq.f32.partialorder %v213_v63, 8.507059e+37  ;;  %1784 = vpow2.f32 %v1612_v9 }
  0xac   :  { %v1781_v57 = vpop.eup %1780 }
  0xad   :  { %v205_v59 = vmul.f32 %v1781_v57, %v203_v55  ;;  %vm210_vm2 = vweird.f32 %v1781_v57  ;;  %v1783_v4 = vpop.eup %1782 }
  0xae   :  { %vm211_vm4 = vmor %vm209_vm3, %vm210_vm2  ;;  %v1785_v11 = vpop.eup %1784 }
  0xaf   :  { %v206_v60 = vsub.f32 1.0, %v205_v59  ;;  %v223_v12 = vadd.f32 1.0, %v1785_v11  ;;  %vm261_vm2 = vmand %vm2141_vm14, %vm260_vm15  ;;  %v2203_v59 = vpop.f32.mrf.mxu0 }
  0xb0   :  { %vm2149_vm3 = vmand %vm126_vm12, %vm260_vm15 }
  0xb1   :  { %v207_v62 = vmul.f32 %v1781_v57, %v206_v60  ;;  %1786 = vrcp.f32 %v223_v12  ;;  %v235_v23 = vand.u32 2147483648, %v223_v12  ;;  %vm229_vm9 = vweird.f32 %v223_v12 }
  0xb2   :  { %v233_v24 = vand.u32 2147483647, %v223_v12 }
  0xb3   :  { %v208_v0 = vadd.f32 %v1781_v57, %v207_v62  ;;  %v236_v26 = vor.u32 1.1754944e-38, %v235_v23 }
  0xb4   :  { %vm234_vm11 = vcmp.eq.f32.partialorder %v233_v24, 8.507059e+37 }
  0xb5   :  { %v212_v2 = vsel %vm211_vm4, %v1781_v57, %v208_v0 }
  0xb6   :  { %v217_v5 = vsel %vm214_vm5, %v216_v1, %v212_v2 }
  0xb7   :  { %v240_v6 = vmul.f32 %v1783_v4, %v217_v5  ;;  %v1787_v13 = vpop.eup %1786  ;;  %v239_v18 = vmul.f32 0.0, %v217_v5 }
  0xb8   :  { %v225_v14 = vmul.f32 %v1787_v13, %v223_v12  ;;  %vm230_vm8 = vweird.f32 %v1787_v13 }
  0xb9   :  { %242 = vrot.lane.b32.xlu0 %v240_v6, %s1895_s1  ;;  %vm231_vm10 = vmor %vm229_vm9, %vm230_vm8  ;;  %vm364_vm8 = vcmp.gt.s32.totalorder %v2122_v49, 1  ;;  %vm2653_vm9 = vcmask 523264  }
  0xba   :  { %v226_v16 = vsub.f32 1.0, %v225_v14  ;;  %v365_v50 = vsel %vm364_vm8, 1, %v1894_v3 }
  0xbc   :  { %v227_v17 = vmul.f32 %v1787_v13, %v226_v16 }
  0xbe   :  { %v228_v22 = vadd.f32 %v1787_v13, %v227_v17 }
  0xc0   :  { %v232_v25 = vsel %vm231_vm10, %v1787_v13, %v228_v22 }
  0xc1   :  { %251 = vperm.xlu0 %1768, %v249_v7   ;;  %v237_v30 = vsel %vm234_vm11, %v236_v26, %v232_v25 }
  0xc9   :  { %374 = vperm.xlu0 %1768, %v372_v10  }
 0x12b   :  { %v243_v19 = vpop.permute.xlu0 %242 }
 0x12c   :  { %v245_v21 = vadd.f32 %v243_v19, %v239_v18 }
 0x12e   :  { %1788 = vtanh.f32 %v245_v21  ;;  %269 = vrot.lane.b32.xlu2 %v245_v21, %s1895_s1 }
 0x133   :  { %v252_v38 = vpop.permute.xlu0 %251 }
 0x134   :  { %v1789_v29 = vpop.eup %1788  ;;  %vm253_vm1 = vcmp.eq.s32.totalorder %v252_v38, 1 }
 0x135   :  { %v247_v31 = vmul.f32 %v1789_v29, %v237_v30  ;;  %vm254_vm4 = vmand %vm126_vm12, %vm253_vm1 }
 0x136   :  { %vm2157_vm5 = vmand %vm2141_vm14, %vm253_vm1 }
 0x137   :  { %264 = vrot.lane.b32.xlu1 %v247_v31, %s1895_s1  ;;  %vm262_vm6 = vmor %vm254_vm4, %vm261_vm2 }
 0x13b   :  { %v2185_v55 = vpop.permute.xlu0 %374 }
 0x13c   :  { %vm376_vm10 = vcmp.eq.s32.totalorder %v2185_v55, 1 }
 0x13d   :  { %vm926_vm13 = vmand %vm126_vm12, %vm376_vm10 }
 0x188   :  { %v270_v46 = vpop.permute.xlu2 %269 }
 0x189   :  { %v2165_v47 = vsel %vm262_vm6, %v270_v46, 0.0 }
 0x18a   :  { %v351_v48 = vrot.slane %v2165_v47, 6 }
 0x18c   :  { %352 = vrot.lane.b32.xlu2 %v351_v48, %s1895_s1 }
 0x194   :  { %367 = vperm.xlu2 %1770, %v365_v50  }
 0x1a9   :  { %v265_v51 = vpop.permute.xlu1 %264 }
 0x1aa   :  { %v2171_v52 = vsel %vm262_vm6, %v265_v51, 0.0 }
 0x1ab   :  { %v273_v53 = vpack.c.bf16 %v2171_v52, %v2171_v52 }
 0x1ad   :  { %1613 = vmatmul.msk.bf16.vlgmr.msrb.gmra.mxu0 %vm2653_vm9, %v273_v53  ;;  %1614 = vmatmul.msk.bf16.vlgmr.msra.gmra.mxu1 %vm2653_vm9, %v273_v53 }
 0x1ae   :  { %736 = vmatpush.bf16.msrb.mxu0 %v2017_v20  ;;  %749 = vmatpush.bf16.msra.mxu1 %v1988_v8 }
 0x1b2   :  { %737 = vmatpush.bf16.msrb.mxu0 %v2039_v28  ;;  %750 = vmatpush.bf16.msra.mxu1 %v2006_v15 }
 0x1b6   :  { %738 = vmatpush.bf16.msrb.mxu0 %v2060_v34  ;;  %751 = vmatpush.bf16.msra.mxu1 %v2037_v27 }
 0x1ba   :  { %739 = vmatpush.bf16.msrb.mxu0 %v2073_v37  ;;  %752 = vmatpush.bf16.msra.mxu1 %v2058_v33 }
 0x1e6   :  { %v353_v54 = vpop.permute.xlu2 %352 }
 0x1ee   :  { %v2188_v57 = vpop.permute.xlu2 %367 }
 0x1ef   :  { %vm369_vm11 = vcmp.eq.s32.totalorder %v2188_v57, 1 }
 0x1f0   :  { %vm927_vm15 = vmand %vm2141_vm14, %vm369_vm11 }
 0x1f1   :  { %vm2199_vm1 = vmor %vm926_vm13, %vm927_vm15 }
 0x22a   :  { %v286_v60 = vpop.f32.mrf.mxu0  ;;  %v299_v61 = vpop.f32.mrf.mxu1 }
 0x22b   :  { %v305_v62 = vrot.slane %v286_v60, 6  ;;  %v306_v6 = vrot.slane %v299_v61, 6 }
 0x22d   :  { %v309_v63 = vadd.f32 %v305_v62, %v2116_v45  ;;  %v310_v9 = vadd.f32 %v306_v6, %v2126_v56 }
 0x22f   :  { %v1615_v0 = vmul.f32 -1.442695, %v309_v63  ;;  %v1616_v23 = vmul.f32 -1.442695, %v310_v9 }
 0x231   :  { %1790 = vpow2.f32 %v1615_v0 }
 0x232   :  { %v288_v1 = vpop.f32.mrf.mxu0  ;;  %v301_v2 = vpop.f32.mrf.mxu1 }
 0x237   :  { %v1791_v4 = vpop.eup %1790 }
 0x238   :  { %v314_v5 = vadd.f32 1.0, %v1791_v4 }
 0x23a   :  { %1792 = vrcp.f32 %v314_v5  ;;  %v326_v12 = vand.u32 2147483648, %v314_v5  ;;  %v324_v14 = vand.u32 2147483647, %v314_v5  ;;  %vm320_vm4 = vweird.f32 %v314_v5 }
 0x23b   :  { %1794 = vtanh.f32 %v310_v9 }
 0x23c   :  { %v327_v17 = vor.u32 1.1754944e-38, %v326_v12  ;;  %vm325_vm8 = vcmp.eq.f32.partialorder %v324_v14, 8.507059e+37  ;;  %1796 = vpow2.f32 %v1616_v23 }
 0x240   :  { %v1793_v7 = vpop.eup %1792 }
 0x241   :  { %v316_v10 = vmul.f32 %v1793_v7, %v314_v5  ;;  %vm321_vm2 = vweird.f32 %v1793_v7  ;;  %v1795_v19 = vpop.eup %1794 }
 0x242   :  { %vm322_vm6 = vmor %vm320_vm4, %vm321_vm2  ;;  %v1797_v24 = vpop.eup %1796  ;;  %vm483_vm4 = vcmp.gt.s32.totalorder %v2122_v49, 2 }
 0x243   :  { %v317_v11 = vsub.f32 1.0, %v316_v10  ;;  %v334_v25 = vadd.f32 1.0, %v1797_v24  ;;  %v484_v63 = vsel %vm483_vm4, 1, %v1894_v3 }
 0x245   :  { %v318_v13 = vmul.f32 %v1793_v7, %v317_v11  ;;  %1798 = vrcp.f32 %v334_v25  ;;  %v346_v50 = vand.u32 2147483648, %v334_v25  ;;  %vm340_vm15 = vweird.f32 %v334_v25 }
 0x246   :  { %v344_v51 = vand.u32 2147483647, %v334_v25 }
 0x247   :  { %v319_v16 = vadd.f32 %v1793_v7, %v318_v13  ;;  %v347_v60 = vor.u32 1.1754944e-38, %v346_v50 }
 0x249   :  { %v323_v18 = vsel %vm322_vm6, %v1793_v7, %v319_v16  ;;  %vm345_vm6 = vcmp.eq.f32.partialorder %v344_v51, 8.507059e+37 }
 0x24a   :  { %v328_v21 = vsel %vm325_vm8, %v327_v17, %v323_v18  ;;  %vm370_vm8 = vmand %vm126_vm12, %vm369_vm11  ;;  %vm490_vm11 = vcmp.gt.s32.totalorder %v2122_v49, 5 }
 0x24b   :  { %v356_v22 = vmul.f32 %v1795_v19, %v328_v21  ;;  %v1799_v26 = vpop.eup %1798  ;;  %v355_v32 = vmul.f32 %v353_v54, %v328_v21  ;;  %v491_v55 = vsel %vm490_vm11, 1, %v1894_v3 }
 0x24c   :  { %v336_v29 = vmul.f32 %v1799_v26, %v334_v25  ;;  %vm341_vm13 = vweird.f32 %v1799_v26 }
 0x24d   :  { %358 = vrot.lane.b32.xlu1 %v356_v22, %s1895_s1  ;;  %vm342_vm2 = vmor %vm340_vm15, %vm341_vm13 }
 0x24e   :  { %v337_v30 = vsub.f32 1.0, %v336_v29  ;;  %vm377_vm13 = vmand %vm2141_vm14, %vm376_vm10 }
 0x24f   :  { %vm2220_vm15 = vmor %vm370_vm8, %vm377_vm13 }
 0x250   :  { %v338_v31 = vmul.f32 %v1799_v26, %v337_v30 }
 0x252   :  { %v339_v46 = vadd.f32 %v1799_v26, %v338_v31 }
 0x254   :  { %v343_v53 = vsel %vm342_vm2, %v1799_v26, %v339_v46 }
 0x255   :  { %v348_v62 = vsel %vm345_vm6, %v347_v60, %v343_v53 }
 0x2bf   :  { %v359_v36 = vpop.permute.xlu1 %358 }
 0x2c0   :  { %v361_v38 = vadd.f32 %v359_v36, %v355_v32 }
 0x2c2   :  { %1800 = vtanh.f32 %v361_v38  ;;  %v387_v48 = vrot.slane %v361_v38, 2 }
 0x2c4   :  { %388 = vrot.lane.b32.xlu2 %v387_v48, %s1895_s1 }
 0x2c8   :  { %v1801_v61 = vpop.eup %1800 }
 0x2c9   :  { %v363_v54 = vmul.f32 %v1801_v61, %v348_v62 }
 0x2cb   :  { %v380_v0 = vrot.slane %v363_v54, 2 }
 0x2cc   :  { %486 = vperm.xlu2 %1770, %v484_v63  }
 0x2cd   :  { %381 = vrot.lane.b32.xlu1 %v380_v0, %s1895_s1 }
 0x31e   :  { %v389_v2 = vpop.permute.xlu2 %388 }
 0x31f   :  { %v2227_v4 = vsel %vm2220_vm15, %v389_v2, %v2165_v47 }
 0x320   :  { %v470_v57 = vrot.slane %v2227_v4, 4 }
 0x322   :  { %471 = vrot.lane.b32.xlu0 %v470_v57, %s1895_s1 }
 0x326   :  { %v2253_v9 = vpop.permute.xlu2 %486 }
 0x327   :  { %vm488_vm10 = vcmp.eq.s32.totalorder %v2253_v9, 1 }
 0x328   :  { %vm820_vm4 = vmand %vm2141_vm14, %vm488_vm10 }
 0x32a   :  { %493 = vperm.xlu0 %1768, %v491_v55  }
 0x33f   :  { %v2233_v5 = vpop.permute.xlu1 %381 }
 0x340   :  { %v2239_v6 = vsel %vm2220_vm15, %v2233_v5, %v2171_v52  ;;  %v2296_v9 = vsel %vm2220_vm15, %v2233_v5, 0.0 }
 0x341   :  { %v392_v47 = vpack.c.bf16 %v2239_v6, %v2239_v6 }
 0x343   :  { %1617 = vmatmul.msk.bf16.vlgmr.msra.gmra.mxu2 %vm2653_vm9, %v392_v47  ;;  %1618 = vmatmul.msk.bf16.vlgmr.msrb.gmra.mxu3 %vm2653_vm9, %v392_v47 }
 0x344   :  { %843 = vmatpush.bf16.msra.mxu2 %v2017_v20  ;;  %856 = vmatpush.bf16.msrb.mxu3 %v1988_v8 }
 0x348   :  { %844 = vmatpush.bf16.msra.mxu2 %v2039_v28  ;;  %857 = vmatpush.bf16.msrb.mxu3 %v2006_v15 }
 0x34c   :  { %845 = vmatpush.bf16.msra.mxu2 %v2060_v34  ;;  %858 = vmatpush.bf16.msrb.mxu3 %v2037_v27 }
 0x350   :  { %846 = vmatpush.bf16.msra.mxu2 %v2073_v37  ;;  %859 = vmatpush.bf16.msrb.mxu3 %v2058_v33 }
 0x394   :  { %v472_v7 = vpop.permute.xlu0 %471 }
 0x39c   :  { %v2256_v10 = vpop.permute.xlu0 %493 }
 0x39d   :  { %vm495_vm2 = vcmp.eq.s32.totalorder %v2256_v10, 1 }
 0x39e   :  { %vm819_vm6 = vmand %vm126_vm12, %vm495_vm2 }
 0x39f   :  { %vm2267_vm8 = vmor %vm819_vm6, %vm820_vm4 }
 0x3a0   :  { %vm496_vm7 = vmand %vm2141_vm14, %vm495_vm2 }
 0x3c6   :  { %v405_v12 = vpop.f32.mrf.mxu2  ;;  %v418_v13 = vpop.f32.mrf.mxu3 }
 0x3c7   :  { %v424_v14 = vrot.slane %v405_v12, 4  ;;  %v425_v23 = vrot.slane %v418_v13, 4 }
 0x3c9   :  { %v428_v16 = vadd.f32 %v424_v14, %v2116_v45  ;;  %v429_v25 = vadd.f32 %v425_v23, %v2126_v56 }
 0x3cb   :  { %v1619_v17 = vmul.f32 -1.442695, %v428_v16  ;;  %v1620_v53 = vmul.f32 -1.442695, %v429_v25 }
 0x3cd   :  { %1802 = vpow2.f32 %v1619_v17 }
 0x3ce   :  { %v407_v18 = vpop.f32.mrf.mxu2  ;;  %v420_v19 = vpop.f32.mrf.mxu3 }
 0x3d3   :  { %v1803_v21 = vpop.eup %1802 }
 0x3d4   :  { %v433_v22 = vadd.f32 1.0, %v1803_v21 }
 0x3d6   :  { %1804 = vrcp.f32 %v433_v22  ;;  %v445_v30 = vand.u32 2147483648, %v433_v22  ;;  %v443_v32 = vand.u32 2147483647, %v433_v22  ;;  %vm439_vm11 = vweird.f32 %v433_v22 }
 0x3d7   :  { %1806 = vtanh.f32 %v429_v25 }
 0x3d8   :  { %v446_v38 = vor.u32 1.1754944e-38, %v445_v30  ;;  %vm444_vm6 = vcmp.eq.f32.partialorder %v443_v32, 8.507059e+37  ;;  %1808 = vpow2.f32 %v1620_v53 }
 0x3dc   :  { %v1805_v24 = vpop.eup %1804 }
 0x3dd   :  { %v435_v26 = vmul.f32 %v1805_v24, %v433_v22  ;;  %vm440_vm13 = vweird.f32 %v1805_v24  ;;  %v1807_v48 = vpop.eup %1806 }
 0x3de   :  { %vm441_vm4 = vmor %vm439_vm11, %vm440_vm13  ;;  %v1809_v60 = vpop.eup %1808 }
 0x3df   :  { %v436_v29 = vsub.f32 1.0, %v435_v26  ;;  %v453_v61 = vadd.f32 1.0, %v1809_v60  ;;  %v1043_v26 = vrot.slane %v2296_v9, 6 }
 0x3e1   :  { %v437_v31 = vmul.f32 %v1805_v24, %v436_v29  ;;  %1810 = vrcp.f32 %v453_v61  ;;  %v465_v13 = vand.u32 2147483648, %v453_v61  ;;  %vm459_vm11 = vweird.f32 %v453_v61 }
 0x3e2   :  { %v463_v14 = vand.u32 2147483647, %v453_v61 }
 0x3e3   :  { %v438_v36 = vadd.f32 %v1805_v24, %v437_v31  ;;  %v466_v17 = vor.u32 1.1754944e-38, %v465_v13 }
 0x3e4   :  { %vm464_vm0 = vcmp.eq.f32.partialorder %v463_v14, 8.507059e+37 }
 0x3e5   :  { %v442_v46 = vsel %vm441_vm4, %v1805_v24, %v438_v36 }
 0x3e6   :  { %v447_v50 = vsel %vm444_vm6, %v446_v38, %v442_v46  ;;  %vm602_vm6 = vcmp.gt.s32.totalorder %v2122_v49, 3 }
 0x3e7   :  { %v475_v51 = vmul.f32 %v1807_v48, %v447_v50  ;;  %v1811_v62 = vpop.eup %1810  ;;  %v474_v2 = vmul.f32 %v472_v7, %v447_v50  ;;  %v603_v7 = vsel %vm602_vm6, 1, %v1894_v3 }
 0x3e8   :  { %v455_v54 = vmul.f32 %v1811_v62, %v453_v61  ;;  %vm460_vm13 = vweird.f32 %v1811_v62 }
 0x3e9   :  { %477 = vrot.lane.b32.xlu1 %v475_v51, %s1895_s1  ;;  %vm461_vm4 = vmor %vm459_vm11, %vm460_vm13 }
 0x3ea   :  { %v456_v63 = vsub.f32 1.0, %v455_v54  ;;  %vm489_vm13 = vmand %vm126_vm12, %vm488_vm10  ;;  %vm2654_vm10 = vcmask 1043456  }
 0x3eb   :  { %vm497_vm11 = vmor %vm489_vm13, %vm496_vm7  ;;  %vm1060_vm7 = vcmask 1041408  }
 0x3ec   :  { %v457_v0 = vmul.f32 %v1811_v62, %v456_v63  ;;  %v1061_v1 = vsel %vm1060_vm7, %v2171_v52, %v1043_v26 }
 0x3ee   :  { %v458_v47 = vadd.f32 %v1811_v62, %v457_v0 }
 0x3f0   :  { %v462_v16 = vsel %vm461_vm4, %v1811_v62, %v458_v47 }
 0x3f1   :  { %v467_v19 = vsel %vm464_vm0, %v466_v17, %v462_v16  ;;  %vm609_vm0 = vcmp.gt.s32.totalorder %v2122_v49, 4 }
 0x3f2   :  { %v610_v10 = vsel %vm609_vm0, 1, %v1894_v3 }
 0x45b   :  { %v478_v57 = vpop.permute.xlu1 %477 }
 0x45c   :  { %v480_v55 = vadd.f32 %v478_v57, %v474_v2 }
 0x45e   :  { %1812 = vtanh.f32 %v480_v55  ;;  %v506_v12 = vrot.slane %v480_v55, 4 }
 0x460   :  { %507 = vrot.lane.b32.xlu2 %v506_v12, %s1895_s1 }
 0x464   :  { %v1813_v18 = vpop.eup %1812 }
 0x465   :  { %v482_v21 = vmul.f32 %v1813_v18, %v467_v19 }
 0x467   :  { %v499_v22 = vrot.slane %v482_v21, 4 }
 0x468   :  { %605 = vperm.xlu2 %1770, %v603_v7  }
 0x469   :  { %500 = vrot.lane.b32.xlu1 %v499_v22, %s1895_s1 }
 0x4ba   :  { %v508_v23 = vpop.permute.xlu2 %507 }
 0x4bb   :  { %v2287_v24 = vsel %vm497_vm11, %v508_v23, %v2227_v4 }
 0x4bc   :  { %v589_v25 = vrot.slane %v2287_v24, 2 }
 0x4be   :  { %590 = vrot.lane.b32.xlu0 %v589_v25, %s1895_s1 }
 0x4c2   :  { %v2322_v32 = vpop.permute.xlu2 %605 }
 0x4c3   :  { %vm607_vm15 = vcmp.eq.s32.totalorder %v2322_v32, 1 }
 0x4c4   :  { %vm715_vm4 = vmand %vm2141_vm14, %vm607_vm15 }
 0x4c6   :  { %612 = vperm.xlu0 %1768, %v610_v10  }
 0x4db   :  { %v501_v29 = vpop.permute.xlu1 %500 }
 0x4dc   :  { %v2299_v4 = vsel %vm497_vm11, %v501_v29, 0.0  ;;  %v2302_v30 = vsel %vm497_vm11, %v501_v29, %v2239_v6 }
 0x4dd   :  { %v511_v49 = vpack.c.bf16 %v2302_v30, %v2302_v30  ;;  %v1046_v31 = vrot.slane %v2299_v4, 4 }
 0x4df   :  { %1621 = vmatmul.msk.bf16.vlgmr.msra.gmra.mxu0 %vm2653_vm9, %v511_v49  ;;  %1622 = vmatmul.msk.bf16.vlgmr.msrb.gmra.mxu1 %vm2653_vm9, %v511_v49  ;;  %v2312_v5 = vsel %vm2654_vm10, %v1061_v1, %v1046_v31  ;;  %vm608_vm10 = vmand %vm126_vm12, %vm607_vm15 }
 0x4e0   :  { %950 = vmatpush.bf16.msra.mxu0 %v2017_v20  ;;  %963 = vmatpush.bf16.msrb.mxu1 %v1988_v8 }
 0x4e4   :  { %951 = vmatpush.bf16.msra.mxu0 %v2039_v28  ;;  %964 = vmatpush.bf16.msrb.mxu1 %v2006_v15 }
 0x4e8   :  { %952 = vmatpush.bf16.msra.mxu0 %v2060_v34  ;;  %965 = vmatpush.bf16.msrb.mxu1 %v2037_v27 }
 0x4ec   :  { %953 = vmatpush.bf16.msra.mxu0 %v2073_v37  ;;  %966 = vmatpush.bf16.msrb.mxu1 %v2058_v33 }
 0x530   :  { %v591_v6 = vpop.permute.xlu0 %590 }
 0x538   :  { %v2325_v20 = vpop.permute.xlu0 %612 }
 0x539   :  { %vm614_vm2 = vcmp.eq.s32.totalorder %v2325_v20, 1  ;;  %v1078_v20 = vrot.slane %v2296_v9, 4  ;;  %v2378_v9 = vadd.f32 %v2203_v59, %v54_v42 }
 0x53a   :  { %vm714_vm6 = vmand %vm126_vm12, %vm614_vm2  ;;  %vm2669_vm12 = vcmask 1043456  }
 0x53b   :  { %vm2336_vm13 = vmor %vm714_vm6, %vm715_vm4 }
 0x53c   :  { %vm615_vm9 = vmand %vm2141_vm14, %vm614_vm2  ;;  %vm2670_vm14 = vcmask 523264  }
 0x55c   :  { %v524_v15 = vpop.f32.mrf.mxu0  ;;  %v537_v27 = vpop.f32.mrf.mxu1 }
 0x55d   :  { %v543_v28 = vrot.slane %v524_v15, 2  ;;  %v544_v48 = vrot.slane %v537_v27, 2  ;;  %v1076_v27 = vrot.slane %v2299_v4, 6 }
 0x55f   :  { %v547_v33 = vadd.f32 %v543_v28, %v2116_v45  ;;  %v548_v51 = vadd.f32 %v544_v48, %v2126_v56 }
 0x561   :  { %v1623_v34 = vmul.f32 -1.442695, %v547_v33  ;;  %v1624_v47 = vmul.f32 -1.442695, %v548_v51 }
 0x563   :  { %1814 = vpow2.f32 %v1623_v34 }
 0x564   :  { %v526_v37 = vpop.f32.mrf.mxu0  ;;  %v539_v36 = vpop.f32.mrf.mxu1 }
 0x569   :  { %v1815_v38 = vpop.eup %1814 }
 0x56a   :  { %v552_v46 = vadd.f32 1.0, %v1815_v38 }
 0x56c   :  { %1816 = vrcp.f32 %v552_v46  ;;  %v564_v61 = vand.u32 2147483648, %v552_v46  ;;  %v562_v54 = vand.u32 2147483647, %v552_v46  ;;  %vm558_vm0 = vweird.f32 %v552_v46 }
 0x56d   :  { %1818 = vtanh.f32 %v548_v51 }
 0x56e   :  { %v565_v45 = vor.u32 1.1754944e-38, %v564_v61  ;;  %vm563_vm6 = vcmp.eq.f32.partialorder %v562_v54, 8.507059e+37  ;;  %1820 = vpow2.f32 %v1624_v47 }
 0x572   :  { %v1817_v50 = vpop.eup %1816 }
 0x573   :  { %v554_v53 = vmul.f32 %v1817_v50, %v552_v46  ;;  %vm559_vm11 = vweird.f32 %v1817_v50  ;;  %v1819_v2 = vpop.eup %1818 }
 0x574   :  { %vm560_vm4 = vmor %vm558_vm0, %vm559_vm11  ;;  %v1821_v56 = vpop.eup %1820 }
 0x575   :  { %v555_v60 = vsub.f32 1.0, %v554_v53  ;;  %v572_v12 = vadd.f32 1.0, %v1821_v56 }
 0x577   :  { %v556_v62 = vmul.f32 %v1817_v50, %v555_v60  ;;  %1822 = vrcp.f32 %v572_v12  ;;  %v584_v23 = vand.u32 2147483648, %v572_v12  ;;  %vm578_vm0 = vweird.f32 %v572_v12 }
 0x578   :  { %v582_v25 = vand.u32 2147483647, %v572_v12 }
 0x579   :  { %v557_v63 = vadd.f32 %v1817_v50, %v556_v62  ;;  %v585_v26 = vor.u32 1.1754944e-38, %v584_v23 }
 0x57b   :  { %v561_v0 = vsel %vm560_vm4, %v1817_v50, %v557_v63 }
 0x57c   :  { %v566_v57 = vsel %vm563_vm6, %v565_v45, %v561_v0  ;;  %vm583_vm6 = vcmp.eq.f32.partialorder %v582_v25, 8.507059e+37 }
 0x57d   :  { %v594_v55 = vmul.f32 %v1819_v2, %v566_v57  ;;  %v1823_v13 = vpop.eup %1822  ;;  %v593_v18 = vmul.f32 %v591_v6, %v566_v57 }
 0x57e   :  { %v574_v14 = vmul.f32 %v1823_v13, %v572_v12  ;;  %vm579_vm11 = vweird.f32 %v1823_v13 }
 0x57f   :  { %596 = vrot.lane.b32.xlu1 %v594_v55, %s1895_s1  ;;  %vm580_vm4 = vmor %vm578_vm0, %vm579_vm11  ;;  %vm1064_vm0 = vcmask 1045504  }
 0x580   :  { %v575_v16 = vsub.f32 1.0, %v574_v14  ;;  %vm616_vm11 = vmor %vm608_vm10, %vm615_vm9 }
 0x581   :  { %vm2671_vm9 = vmmov %vm2670_vm14 }
 0x582   :  { %v576_v17 = vmul.f32 %v1823_v13, %v575_v16 }
 0x584   :  { %v577_v21 = vadd.f32 %v1823_v13, %v576_v17 }
 0x586   :  { %v581_v10 = vsel %vm580_vm4, %v1823_v13, %v577_v21 }
 0x587   :  { %v586_v49 = vsel %vm583_vm6, %v585_v26, %v581_v10 }
 0x5f1   :  { %v597_v19 = vpop.permute.xlu1 %596 }
 0x5f2   :  { %v599_v7 = vadd.f32 %v597_v19, %v593_v18 }
 0x5f4   :  { %1824 = vtanh.f32 %v599_v7  ;;  %v625_v22 = vrot.slane %v599_v7, 6 }
 0x5f6   :  { %626 = vrot.lane.b32.xlu2 %v625_v22, %s1895_s1 }
 0x5fa   :  { %v1825_v29 = vpop.eup %1824 }
 0x5fb   :  { %v601_v31 = vmul.f32 %v1825_v29, %v586_v49 }
 0x5fd   :  { %v618_v1 = vrot.slane %v601_v31, 6 }
 0x5ff   :  { %619 = vrot.lane.b32.xlu1 %v618_v1, %s1895_s1 }
 0x650   :  { %v627_v6 = vpop.permute.xlu2 %626 }
 0x651   :  { %v2354_v15 = vsel %vm616_vm11, %v627_v6, %v2287_v24 }
 0x652   :  { %702 = vrot.lane.b32.xlu0 %v2354_v15, %s1895_s1 }
 0x671   :  { %v620_v28 = vpop.permute.xlu1 %619 }
 0x672   :  { %v622_v40 = vsel %vm616_vm11, %v620_v28, 0.0  ;;  %v2361_v32 = vsel %vm616_vm11, %v620_v28, %v2302_v30 }
 0x673   :  { %v630_v35 = vpack.c.bf16 %v2361_v32, %v2361_v32  ;;  %v1049_v33 = vrot.slane %v622_v40, 2  ;;  %v1086_v24 = vsel %vm1060_vm7, %v622_v40, %v1076_v27 }
 0x674   :  { %v2367_v34 = vsel %vm2669_vm12, %v1086_v24, %v1078_v20 }
 0x675   :  { %v2371_v4 = vsel %vm1064_vm0, %v2312_v5, %v1049_v33  ;;  %1625 = vmatmul.msk.bf16.vlgmr.msrb.gmra.mxu2 %vm2670_vm14, %v630_v35  ;;  %1626 = vmatmul.msk.bf16.vlgmr.msra.gmra.mxu3 %vm2671_vm9, %v630_v35 }
 0x6c4   :  { %v703_v14 = vpop.permute.xlu0 %702 }
 0x6f8   :  { %v643_v30 = vpop.f32.mrf.mxu2  ;;  %v656_v37 = vpop.f32.mrf.mxu3 }
 0x6f9   :  { %v660_v36 = vadd.f32 %v643_v30, %v2378_v9  ;;  %v661_v53 = vadd.f32 %v656_v37, %v2112_v43 }
 0x6fb   :  { %v1627_v38 = vmul.f32 -1.442695, %v660_v36  ;;  %v1628_v57 = vmul.f32 -1.442695, %v661_v53 }
 0x6fd   :  { %1826 = vpow2.f32 %v1627_v38 }
 0x700   :  { %v645_v46 = vpop.f32.mrf.mxu2  ;;  %v658_v48 = vpop.f32.mrf.mxu3 }
 0x703   :  { %v1827_v50 = vpop.eup %1826 }
 0x704   :  { %v665_v5 = vadd.f32 1.0, %v1827_v50 }
 0x706   :  { %1828 = vrcp.f32 %v665_v5  ;;  %v677_v39 = vand.u32 2147483648, %v665_v5  ;;  %v675_v59 = vand.u32 2147483647, %v665_v5  ;;  %vm671_vm15 = vweird.f32 %v665_v5 }
 0x707   :  { %1830 = vtanh.f32 %v661_v53 }
 0x708   :  { %v678_v54 = vor.u32 1.1754944e-38, %v677_v39  ;;  %vm676_vm4 = vcmp.eq.f32.partialorder %v675_v59, 8.507059e+37  ;;  %1832 = vpow2.f32 %v1628_v57 }
 0x70c   :  { %v1829_v51 = vpop.eup %1828 }
 0x70d   :  { %v667_v60 = vmul.f32 %v1829_v51, %v665_v5  ;;  %vm672_vm10 = vweird.f32 %v1829_v51  ;;  %v1831_v45 = vpop.eup %1830 }
 0x70e   :  { %vm673_vm2 = vmor %vm671_vm15, %vm672_vm10  ;;  %v1833_v55 = vpop.eup %1832 }
 0x70f   :  { %v668_v61 = vsub.f32 1.0, %v667_v60  ;;  %v685_v47 = vadd.f32 1.0, %v1833_v55  ;;  %vm2672_vm10 = vmmov %vm2671_vm9 }
 0x711   :  { %v669_v42 = vmul.f32 %v1829_v51, %v668_v61  ;;  %1834 = vrcp.f32 %v685_v47  ;;  %v697_v21 = vand.u32 2147483648, %v685_v47  ;;  %vm691_vm11 = vweird.f32 %v685_v47 }
 0x712   :  { %v695_v22 = vand.u32 2147483647, %v685_v47 }
 0x713   :  { %v670_v62 = vadd.f32 %v1829_v51, %v669_v42  ;;  %v698_v25 = vor.u32 1.1754944e-38, %v697_v21 }
 0x714   :  { %vm696_vm14 = vcmp.eq.f32.partialorder %v695_v22, 8.507059e+37 }
 0x715   :  { %v674_v63 = vsel %vm673_vm2, %v1829_v51, %v670_v62 }
 0x716   :  { %v679_v0 = vsel %vm676_vm4, %v678_v54, %v674_v63 }
 0x717   :  { %v706_v2 = vmul.f32 %v1831_v45, %v679_v0  ;;  %v1835_v56 = vpop.eup %1834  ;;  %v705_v17 = vmul.f32 %v703_v14, %v679_v0 }
 0x718   :  { %v687_v12 = vmul.f32 %v1835_v56, %v685_v47  ;;  %vm692_vm6 = vweird.f32 %v1835_v56 }
 0x719   :  { %708 = vrot.lane.b32.xlu1 %v706_v2, %s1895_s1  ;;  %vm693_vm12 = vmor %vm691_vm11, %vm692_vm6 }
 0x71a   :  { %v688_v13 = vsub.f32 1.0, %v687_v12 }
 0x71c   :  { %v689_v16 = vmul.f32 %v1835_v56, %v688_v13 }
 0x71e   :  { %v690_v7 = vadd.f32 %v1835_v56, %v689_v16 }
 0x720   :  { %v694_v23 = vsel %vm693_vm12, %v1835_v56, %v690_v7 }
 0x721   :  { %v699_v26 = vsel %vm696_vm14, %v698_v25, %v694_v23 }
 0x78b   :  { %v709_v18 = vpop.permute.xlu1 %708 }
 0x78c   :  { %v711_v19 = vadd.f32 %v709_v18, %v705_v17 }
 0x78e   :  { %1836 = vtanh.f32 %v711_v19  ;;  %724 = vrot.lane.b32.xlu0 %v711_v19, %s1895_s1 }
 0x794   :  { %v1837_v10 = vpop.eup %1836 }
 0x795   :  { %v713_v29 = vmul.f32 %v1837_v10, %v699_v26 }
 0x797   :  { %718 = vrot.lane.b32.xlu2 %v713_v29, %s1895_s1 }
 0x7f1   :  { %v2385_v49 = vpop.permute.xlu2 %718 }
 0x7f2   :  { %v2391_v31 = vsel %vm2336_vm13, %v2385_v49, %v2361_v32 }
 0x7f3   :  { %v728_v1 = vpack.c.bf16 %v2391_v31, %v2391_v31 }
 0x7f5   :  { %1629 = vmatmul.msk.bf16.vlgmr.msrb.gmra.mxu0 %vm2671_vm9, %v728_v1  ;;  %1630 = vmatmul.msk.bf16.vlgmr.msra.gmra.mxu1 %vm2672_vm10, %v728_v1 }
 0x800   :  { %v725_v6 = vpop.permute.xlu0 %724 }
 0x801   :  { %v2400_v27 = vsel %vm2336_vm13, %v725_v6, %v2354_v15 }
 0x802   :  { %v806_v28 = vrot.slane %v2400_v27, 6 }
 0x804   :  { %807 = vrot.lane.b32.xlu1 %v806_v28, %s1895_s1 }
 0x872   :  { %v741_v20 = vpop.f32.mrf.mxu0  ;;  %v754_v40 = vpop.f32.mrf.mxu1 }
 0x873   :  { %v760_v32 = vrot.slane %v741_v20, 6  ;;  %v761_v38 = vrot.slane %v754_v40, 6  ;;  %v2431_v40 = vsel %vm2336_vm13, %v2385_v49, 0.0 }
 0x875   :  { %v764_v35 = vadd.f32 %v760_v32, %v2378_v9  ;;  %v765_v15 = vadd.f32 %v761_v38, %v2112_v43 }
 0x876   :  { %v808_v55 = vpop.permute.xlu1 %807 }
 0x877   :  { %v1631_v33 = vmul.f32 -1.442695, %v764_v35  ;;  %v1632_v54 = vmul.f32 -1.442695, %v765_v15 }
 0x879   :  { %1838 = vpow2.f32 %v1631_v33 }
 0x87a   :  { %v743_v24 = vpop.f32.mrf.mxu0  ;;  %v756_v30 = vpop.f32.mrf.mxu1 }
 0x87f   :  { %v1839_v37 = vpop.eup %1838 }
 0x880   :  { %v769_v36 = vadd.f32 1.0, %v1839_v37 }
 0x882   :  { %1840 = vrcp.f32 %v769_v36  ;;  %v781_v5 = vand.u32 2147483648, %v769_v36  ;;  %v779_v53 = vand.u32 2147483647, %v769_v36  ;;  %vm775_vm2 = vweird.f32 %v769_v36 }
 0x883   :  { %1842 = vtanh.f32 %v765_v15 }
 0x884   :  { %v782_v61 = vor.u32 1.1754944e-38, %v781_v5  ;;  %vm780_vm6 = vcmp.eq.f32.partialorder %v779_v53, 8.507059e+37  ;;  %1844 = vpow2.f32 %v1632_v54 }
 0x888   :  { %v1841_v46 = vpop.eup %1840 }
 0x889   :  { %v771_v48 = vmul.f32 %v1841_v46, %v769_v36  ;;  %vm776_vm15 = vweird.f32 %v1841_v46  ;;  %v1843_v42 = vpop.eup %1842 }
 0x88a   :  { %vm777_vm4 = vmor %vm775_vm2, %vm776_vm15  ;;  %v1845_v63 = vpop.eup %1844 }
 0x88b   :  { %v772_v50 = vsub.f32 1.0, %v771_v48  ;;  %v789_v45 = vadd.f32 1.0, %v1845_v63  ;;  %vm2673_vm15 = vmmov %vm2672_vm10 }
 0x88d   :  { %v773_v51 = vmul.f32 %v1841_v46, %v772_v50  ;;  %1846 = vrcp.f32 %v789_v45  ;;  %v801_v17 = vand.u32 2147483648, %v789_v45  ;;  %vm795_vm12 = vweird.f32 %v789_v45 }
 0x88e   :  { %v799_v18 = vand.u32 2147483647, %v789_v45 }
 0x88f   :  { %v774_v60 = vadd.f32 %v1841_v46, %v773_v51  ;;  %v802_v7 = vor.u32 1.1754944e-38, %v801_v17 }
 0x890   :  { %vm800_vm9 = vcmp.eq.f32.partialorder %v799_v18, 8.507059e+37 }
 0x891   :  { %v778_v39 = vsel %vm777_vm4, %v1841_v46, %v774_v60 }
 0x892   :  { %v783_v59 = vsel %vm780_vm6, %v782_v61, %v778_v39 }
 0x893   :  { %v811_v62 = vmul.f32 %v1843_v42, %v783_v59  ;;  %v1847_v0 = vpop.eup %1846  ;;  %v810_v56 = vmul.f32 %v808_v55, %v783_v59 }
 0x894   :  { %v791_v2 = vmul.f32 %v1847_v0, %v789_v45  ;;  %vm796_vm11 = vweird.f32 %v1847_v0 }
 0x895   :  { %813 = vrot.lane.b32.xlu2 %v811_v62, %s1895_s1  ;;  %vm797_vm14 = vmor %vm795_vm12, %vm796_vm11 }
 0x896   :  { %v792_v57 = vsub.f32 1.0, %v791_v2 }
 0x898   :  { %v793_v47 = vmul.f32 %v1847_v0, %v792_v57 }
 0x89a   :  { %v794_v14 = vadd.f32 %v1847_v0, %v793_v47 }
 0x89c   :  { %v798_v19 = vsel %vm797_vm14, %v1847_v0, %v794_v14 }
 0x89d   :  { %v803_v22 = vsel %vm800_vm9, %v802_v7, %v798_v19 }
 0x8ef   :  { %v814_v12 = vpop.permute.xlu2 %813 }
 0x8f0   :  { %v816_v13 = vadd.f32 %v814_v12, %v810_v56 }
 0x8f2   :  { %1848 = vtanh.f32 %v816_v13  ;;  %v830_v16 = vrot.slane %v816_v13, 2 }
 0x8f4   :  { %831 = vrot.lane.b32.xlu1 %v830_v16, %s1895_s1 }
 0x8f8   :  { %v1849_v21 = vpop.eup %1848 }
 0x8f9   :  { %v818_v23 = vmul.f32 %v1849_v21, %v803_v22 }
 0x8fb   :  { %v823_v25 = vrot.slane %v818_v23, 2 }
 0x8fd   :  { %824 = vrot.lane.b32.xlu0 %v823_v25, %s1895_s1 }
 0x966   :  { %v832_v10 = vpop.permute.xlu1 %831 }
 0x967   :  { %v2412_v26 = vsel %vm2267_vm8, %v832_v10, %v2400_v27 }
 0x968   :  { %v913_v29 = vrot.slane %v2412_v26, 4 }
 0x96a   :  { %914 = vrot.lane.b32.xlu2 %v913_v29, %s1895_s1 }
 0x96f   :  { %v825_v1 = vpop.permute.xlu0 %824 }
 0x970   :  { %v2418_v6 = vsel %vm2267_vm8, %v825_v1, 0.0  ;;  %v2423_v28 = vsel %vm2267_vm8, %v825_v1, %v2391_v31  ;;  %v2450_v1 = vld [vmem:[%s2643_s2] sm:$0xff] }
 0x971   :  { %v835_v20 = vpack.c.bf16 %v2423_v28, %v2423_v28  ;;  %v1052_v27 = vrot.slane %v2418_v6, 6  ;;  %vm1327_vm9 = vcmp.eq.s32.totalorder %v2450_v1, 0 }
 0x973   :  { %v2435_v32 = vsel %vm1060_vm7, %v2431_v40, %v1052_v27  ;;  %1633 = vmatmul.msk.bf16.vlgmr.msra.gmra.mxu2 %vm2672_vm10, %v835_v20  ;;  %1634 = vmatmul.msk.bf16.vlgmr.msrb.gmra.mxu3 %vm2673_vm15, %v835_v20  ;;  %v1329_v20 = vsel %vm1327_vm9, 1, %v1894_v3  ;;  %v1323_v27 = vld [vmem:[%s2643_s2 + $0x8] sm:$0xff]  ;;  %vm2674_vm15 = vcmask 1043456  }
 0x974   :  { %vm1435_vm10 = vcmp.eq.s32.totalorder %v1323_v27, 1 }
 0x9c4   :  { %v915_v57 = vpop.permute.xlu2 %914 }
 0x9f6   :  { %v848_v11 = vpop.f32.mrf.mxu2  ;;  %v861_v31 = vpop.f32.mrf.mxu3 }
 0x9f7   :  { %v867_v35 = vrot.slane %v848_v11, 4  ;;  %v868_v36 = vrot.slane %v861_v31, 4 }
 0x9f9   :  { %v871_v33 = vadd.f32 %v867_v35, %v2378_v9  ;;  %v872_v46 = vadd.f32 %v868_v36, %v2112_v43 }
 0x9fb   :  { %v1635_v24 = vmul.f32 -1.442695, %v871_v33  ;;  %v1636_v62 = vmul.f32 -1.442695, %v872_v46 }
 0x9fd   :  { %1850 = vpow2.f32 %v1635_v24 }
 0x9fe   :  { %v850_v30 = vpop.f32.mrf.mxu2  ;;  %v863_v37 = vpop.f32.mrf.mxu3 }
 0xa03   :  { %v1851_v8 = vpop.eup %1850 }
 0xa04   :  { %v876_v49 = vadd.f32 1.0, %v1851_v8 }
 0xa06   :  { %1852 = vrcp.f32 %v876_v49  ;;  %v888_v50 = vand.u32 2147483648, %v876_v49  ;;  %v886_v51 = vand.u32 2147483647, %v876_v49  ;;  %vm882_vm13 = vweird.f32 %v876_v49 }
 0xa07   :  { %1854 = vtanh.f32 %v872_v46 }
 0xa08   :  { %v889_v60 = vor.u32 1.1754944e-38, %v888_v50  ;;  %vm887_vm4 = vcmp.eq.f32.partialorder %v886_v51, 8.507059e+37  ;;  %1856 = vpow2.f32 %v1636_v62 }
 0xa0c   :  { %v1853_v38 = vpop.eup %1852 }
 0xa0d   :  { %v878_v15 = vmul.f32 %v1853_v38, %v876_v49  ;;  %vm883_vm8 = vweird.f32 %v1853_v38  ;;  %v1855_v39 = vpop.eup %1854 }
 0xa0e   :  { %vm884_vm2 = vmor %vm882_vm13, %vm883_vm8  ;;  %v1857_v54 = vpop.eup %1856  ;;  %vm2675_vm8 = vcmask 523264  }
 0xa0f   :  { %v879_v48 = vsub.f32 1.0, %v878_v15  ;;  %v896_v63 = vadd.f32 1.0, %v1857_v54  ;;  %vm2676_vm13 = vmmov %vm2675_vm8 }
 0xa11   :  { %v880_v5 = vmul.f32 %v1853_v38, %v879_v48  ;;  %1858 = vrcp.f32 %v896_v63  ;;  %v908_v16 = vand.u32 2147483648, %v896_v63  ;;  %vm902_vm11 = vweird.f32 %v896_v63 }
 0xa12   :  { %v906_v17 = vand.u32 2147483647, %v896_v63 }
 0xa13   :  { %v881_v53 = vadd.f32 %v1853_v38, %v880_v5  ;;  %v909_v19 = vor.u32 1.1754944e-38, %v908_v16  ;;  %v1746_v16 = vld [vmem:[%s2644_s6 + $0x24] sm:$0xf0] }
 0xa14   :  { %vm907_vm14 = vcmp.eq.f32.partialorder %v906_v17, 8.507059e+37 }
 0xa15   :  { %v885_v61 = vsel %vm884_vm2, %v1853_v38, %v881_v53 }
 0xa16   :  { %v890_v42 = vsel %vm887_vm4, %v889_v60, %v885_v61 }
 0xa17   :  { %v918_v59 = vmul.f32 %v1855_v39, %v890_v42  ;;  %v1859_v45 = vpop.eup %1858  ;;  %v917_v47 = vmul.f32 %v915_v57, %v890_v42 }
 0xa18   :  { %v898_v0 = vmul.f32 %v1859_v45, %v896_v63  ;;  %vm903_vm6 = vweird.f32 %v1859_v45 }
 0xa19   :  { %920 = vrot.lane.b32.xlu0 %v918_v59, %s1895_s1  ;;  %vm904_vm12 = vmor %vm902_vm11, %vm903_vm6  ;;  %vm1328_vm11 = vcmp.eq.s32.totalorder %v1323_v27, 0 }
 0xa1a   :  { %v899_v2 = vsub.f32 1.0, %v898_v0 }
 0xa1c   :  { %v900_v55 = vmul.f32 %v1859_v45, %v899_v2 }
 0xa1e   :  { %v901_v13 = vadd.f32 %v1859_v45, %v900_v55  ;;  %v1667_v55 = vld [vmem:[%s2644_s6 + $0x30] sm:$0xf] }
 0xa20   :  { %v905_v18 = vsel %vm904_vm12, %v1859_v45, %v901_v13  ;;  %v1669_v13 = vld [vmem:[%s2644_s6 + $0x38] sm:$0xf0] }
 0xa21   :  { %v910_v21 = vsel %vm907_vm14, %v909_v19, %v905_v18  ;;  %v1745_v18 = vld [vmem:[%s2644_s6 + $0x24] sm:$0xf]  ;;  %v1661_v19 = vld [vmem:[%s2644_s6 + $0x28] sm:$0xf0] }
 0xa8b   :  { %v921_v56 = vpop.permute.xlu0 %920 }
 0xa8c   :  { %v923_v12 = vadd.f32 %v921_v56, %v917_v47  ;;  %v1748_v47 = vld [vmem:[%s2644_s6 + $0x34] sm:$0xf0]  ;;  %v1747_v56 = vld [vmem:[%s2644_s6 + $0x34] sm:$0xf] }
 0xa8d   :  { %v1672_v17 = vor.u32 %v1747_v56, %v1669_v13  ;;  %v1759_v56 = vld [vmem:[%s2645_s8 + $0x50] sm:$0xff]  ;;  %v1758_v13 = vld [vmem:[%s2645_s8 + $0x48] sm:$0xff] }
 0xa8e   :  { %1860 = vtanh.f32 %v923_v12  ;;  %v937_v14 = vrot.slane %v923_v12, 4  ;;  %v1668_v12 = vor.u32 %v1748_v47, %v1667_v55  ;;  %v1760_v55 = vld [vmem:[%s2645_s8 + $0x58] sm:$0xff]  ;;  %v1751_v47 = vld [vmem:[%s2645_s8 + $0x10] sm:$0xff] }
 0xa8f   :  { %1167 = vmatpush.bf16.msra.mxu3 %v1672_v17  ;;  %v1100_v17 = vld [vmem:[%s2647_s7] sm:$0x3] }
 0xa90   :  { %938 = vrot.lane.b32.xlu2 %v937_v14, %s1895_s1  ;;  %v1659_v14 = vld [vmem:[%s2644_s6 + $0x20] sm:$0xf]  ;;  %1153 = vmatpush.bf16.msrb.mxu2 %v1668_v12  ;;  %v1750_v12 = vld [vmem:[%s2645_s8 + $0x8] sm:$0xff] }
 0xa94   :  { %v1861_v7 = vpop.eup %1860 }
 0xa95   :  { %v925_v22 = vmul.f32 %v1861_v7, %v910_v21  ;;  %v1660_v7 = vor.u32 %v1746_v16, %v1659_v14  ;;  %v1749_v14 = vld [vmem:[%s2645_s8] sm:$0xff] }
 0xa96   :  { %v1757_v16 = vld [vmem:[%s2645_s8 + $0x40] sm:$0xff] }
 0xa97   :  { %v930_v23 = vrot.slane %v925_v22, 4  ;;  %v1664_v22 = vor.u32 %v1745_v18, %v1661_v19  ;;  %1154 = vmatpush.bf16.msrb.mxu2 %v1660_v7  ;;  %v1102_v7 = vperm.slane %v1100_v17, 0 }
 0xa99   :  { %931 = vrot.lane.b32.xlu1 %v930_v23, %s1895_s1  ;;  %v1651_v23 = vld [vmem:[%s2644_s6 + $0x10] sm:$0xf]  ;;  %1168 = vmatpush.bf16.msra.mxu3 %v1664_v22 }
 0xaea   :  { %v939_v25 = vpop.permute.xlu2 %938 }
 0xaeb   :  { %v941_v10 = vsel %vm2199_vm1, %v939_v25, %v2412_v26  ;;  %v1437_v26 = vsel %vm1435_vm10, 1, %v1894_v3  ;;  %v1744_v25 = vld [vmem:[%s2644_s6 + $0x14] sm:$0xf0] }
 0xaec   :  { %v1020_v29 = vrot.slane %v941_v10, 2  ;;  %v1652_v10 = vor.u32 %v1744_v25, %v1651_v23 }
 0xaee   :  { %1021 = vrot.lane.b32.xlu0 %v1020_v29, %s1895_s1  ;;  %1155 = vmatpush.bf16.msrb.mxu2 %v1652_v10 }
 0xaf6   :  { %1332 = vperm.xlu0 %1768, %v1329_v20  }
 0xafe   :  { %1442 = vperm.xlu0 %1768, %v1437_v26  }
 0xb0b   :  { %v932_v11 = vpop.permute.xlu1 %931 }
 0xb0c   :  { %v2461_v31 = vsel %vm2199_vm1, %v932_v11, 0.0  ;;  %v935_v35 = vsel %vm2199_vm1, %v932_v11, %v2423_v28 }
 0xb0d   :  { %v942_v33 = vpack.c.bf16 %v935_v35, %v935_v35  ;;  %v1055_v24 = vrot.slane %v2461_v31, 4 }
 0xb0f   :  { %v2469_v30 = vsel %vm2674_vm15, %v2435_v32, %v1055_v24  ;;  %1637 = vmatmul.msk.bf16.vlgmr.msra.gmra.mxu0 %vm2675_vm8, %v942_v33  ;;  %1638 = vmatmul.msk.bf16.vlgmr.msrb.gmra.mxu1 %vm2676_vm13, %v942_v33  ;;  %vm1434_vm15 = vcmp.eq.s32.totalorder %v2450_v1, 1  ;;  %v1742_v1 = vld [vmem:[%s2644_s6 + $0x4] sm:$0xf0]  ;;  %vm2677_vm8 = vmor %vm2149_vm3, %vm2157_vm5  ;;  %vm2678_vm13 = vcmask 1043456   ;;  %vm2679_vm3 = vcmask 261120  }
 0xb10   :  { %vm2680_vm5 = vmmov %vm2679_vm3 }
 0xb60   :  { %v1022_v29 = vpop.permute.xlu0 %1021 }
 0xb8c   :  { %v955_v37 = vpop.f32.mrf.mxu0  ;;  %v968_v8 = vpop.f32.mrf.mxu1 }
 0xb8d   :  { %v974_v49 = vrot.slane %v955_v37, 2  ;;  %v975_v48 = vrot.slane %v968_v8, 2 }
 0xb8f   :  { %v978_v36 = vadd.f32 %v974_v49, %v2378_v9  ;;  %v979_v32 = vadd.f32 %v975_v48, %v2112_v43  ;;  %v1330_v43 = vsel %vm1328_vm11, 1, %v1894_v3  ;;  %vm1341_vm11 = vcmask 162816  }
 0xb91   :  { %v1639_v38 = vmul.f32 -1.442695, %v978_v36  ;;  %v1640_v63 = vmul.f32 -1.442695, %v979_v32 }
 0xb93   :  { %1862 = vpow2.f32 %v1639_v38 }
 0xb94   :  { %v957_v58 = vpop.f32.mrf.mxu0  ;;  %v970_v28 = vpop.f32.mrf.mxu1 }
 0xb95   :  { %v1436_v28 = vsel %vm1434_vm15, 1, %v1894_v3  ;;  %v1741_v3 = vld [vmem:[%s2644_s6 + $0x4] sm:$0xf]  ;;  %vm1421_vm15 = vcmask 519168  }
 0xb99   :  { %v1863_v46 = vpop.eup %1862 }
 0xb9a   :  { %v983_v15 = vadd.f32 1.0, %v1863_v46  ;;  %v1743_v46 = vld [vmem:[%s2644_s6 + $0x14] sm:$0xf] }
 0xb9c   :  { %1864 = vrcp.f32 %v983_v15  ;;  %v995_v53 = vand.u32 2147483648, %v983_v15  ;;  %v993_v61 = vand.u32 2147483647, %v983_v15  ;;  %vm989_vm2 = vweird.f32 %v983_v15 }
 0xb9d   :  { %1866 = vtanh.f32 %v979_v32 }
 0xb9e   :  { %v996_v9 = vor.u32 1.1754944e-38, %v995_v53  ;;  %vm994_vm6 = vcmp.eq.f32.partialorder %v993_v61, 8.507059e+37  ;;  %1868 = vpow2.f32 %v1640_v63  ;;  %v1756_v53 = vld [vmem:[%s2645_s8 + $0x38] sm:$0xff]  ;;  %v1754_v61 = vld [vmem:[%s2645_s8 + $0x28] sm:$0xff] }
 0xb9f   :  { %1294 = vmatpush.bf16.msrb.mxu0 %v1756_v53 }
 0xba2   :  { %v1865_v50 = vpop.eup %1864 }
 0xba3   :  { %v985_v5 = vmul.f32 %v1865_v50, %v983_v15  ;;  %vm990_vm1 = vweird.f32 %v1865_v50  ;;  %v1867_v59 = vpop.eup %1866  ;;  %v1653_v15 = vld [vmem:[%s2644_s6 + $0x18] sm:$0xf0] }
 0xba4   :  { %vm991_vm4 = vmor %vm989_vm2, %vm990_vm1  ;;  %v1869_v45 = vpop.eup %1868  ;;  %v1656_v48 = vor.u32 %v1743_v46, %v1653_v15  ;;  %vm2681_vm1 = vcmask 523264  }
 0xba5   :  { %v986_v51 = vsub.f32 1.0, %v985_v5  ;;  %v1003_v0 = vadd.f32 1.0, %v1869_v45  ;;  %v1645_v5 = vld [vmem:[%s2644_s6 + $0x8] sm:$0xf0]  ;;  %vm2682_vm2 = vmmov %vm2681_vm1 }
 0xba6   :  { %1169 = vmatpush.bf16.msra.mxu3 %v1656_v48 }
 0xba7   :  { %v987_v60 = vmul.f32 %v1865_v50, %v986_v51  ;;  %1870 = vrcp.f32 %v1003_v0  ;;  %v1015_v33 = vand.u32 2147483648, %v1003_v0  ;;  %vm1009_vm14 = vweird.f32 %v1003_v0 }
 0xba8   :  { %v1013_v24 = vand.u32 2147483647, %v1003_v0  ;;  %v1648_v51 = vor.u32 %v1741_v3, %v1645_v5 }
 0xba9   :  { %v988_v39 = vadd.f32 %v1865_v50, %v987_v60  ;;  %v1016_v8 = vor.u32 1.1754944e-38, %v1015_v33  ;;  %v1755_v60 = vld [vmem:[%s2645_s8 + $0x30] sm:$0xff] }
 0xbaa   :  { %vm1014_vm10 = vcmp.eq.f32.partialorder %v1013_v24, 8.507059e+37  ;;  %1170 = vmatpush.bf16.msra.mxu3 %v1648_v51  ;;  %1295 = vmatpush.bf16.msrb.mxu0 %v1755_v60 }
 0xbab   :  { %v992_v42 = vsel %vm991_vm4, %v1865_v50, %v988_v39  ;;  %v1643_v50 = vld [vmem:[%s2644_s6] sm:$0xf]  ;;  %v1069_v39 = vrot.slane %v2461_v31, 6 }
 0xbac   :  { %v997_v62 = vsel %vm994_vm6, %v996_v9, %v992_v42  ;;  %v1644_v32 = vor.u32 %v1742_v1, %v1643_v50  ;;  %v1071_v42 = vrot.slane %v2418_v6, 4 }
 0xbad   :  { %v1025_v54 = vmul.f32 %v1867_v59, %v997_v62  ;;  %v1871_v2 = vpop.eup %1870  ;;  %v1024_v27 = vmul.f32 %v1022_v29, %v997_v62  ;;  %v1081_v62 = vrot.slane %v2171_v52, 2 }
 0xbae   :  { %v1005_v57 = vmul.f32 %v1871_v2, %v1003_v0  ;;  %vm1010_vm12 = vweird.f32 %v1871_v2  ;;  %1156 = vmatpush.bf16.msrb.mxu2 %v1644_v32  ;;  %1296 = vmatpush.bf16.msrb.mxu0 %v1754_v61 }
 0xbaf   :  { %1027 = vrot.lane.b32.xlu1 %v1025_v54, %s1895_s1  ;;  %vm1011_vm9 = vmor %vm1009_vm14, %vm1010_vm12  ;;  %v1074_v54 = vrot.slane %v2431_v40, 2  ;;  %v1088_v31 = vsel %vm1064_vm0, %v2367_v34, %v1081_v62  ;;  %v1207_v34 = vld [vmem:[%s2645_s8 + $0x60] sm:$0xf] }
 0xbb0   :  { %v1006_v21 = vsub.f32 1.0, %v1005_v57  ;;  %v1261_v40 = vunpack.c.l.b16 %v1207_v34  ;;  %v1752_v57 = vld [vmem:[%s2645_s8 + $0x18] sm:$0xff] }
 0xbb2   :  { %v1007_v20 = vmul.f32 %v1871_v2, %v1006_v21  ;;  %v1103_v21 = vperm.slane %v1100_v17, 1 }
 0xbb4   :  { %v1008_v35 = vadd.f32 %v1871_v2, %v1007_v20 }
 0xbb6   :  { %v1012_v37 = vsel %vm1011_vm9, %v1871_v2, %v1008_v35  ;;  %v1753_v2 = vld [vmem:[%s2645_s8 + $0x20] sm:$0xff]  ;;  %vm1390_vm9 = vcmask 130048  }
 0xbb7   :  { %1335 = vperm.xlu1 %1769, %v1330_v43   ;;  %v1017_v36 = vsel %vm1014_vm10, %v1016_v8, %v1012_v37  ;;  %1297 = vmatpush.bf16.msrb.mxu0 %v1753_v2  ;;  %v1333_v37 = vpop.permute.xlu0 %1332  ;;  %v1776_v8 = vld [vmem:[%s2646_s9] ss:$0 sm:$0xff]  ;;  %vm2684_vm10 = vmmov %vm2681_vm1 }
 0xbb8   :  { %vm1337_vm4 = vcmp.eq.s32.totalorder %v1333_v37, 1 }
 0xbbb   :  { %1298 = vmatpush.bf16.msrb.mxu0 %v1752_v57 }
 0xbbf   :  { %1299 = vmatpush.bf16.msrb.mxu0 %v1751_v47  ;;  %v1443_v15 = vpop.permute.xlu0 %1442 }
 0xbc0   :  { %vm1445_vm12 = vcmp.eq.s32.totalorder %v1443_v15, 1 }
 0xbc3   :  { %1300 = vmatpush.bf16.msrb.mxu0 %v1750_v12 }
 0xbc7   :  { %1301 = vmatpush.bf16.msrb.mxu0 %v1749_v14 }
 0xc21   :  { %v1028_v26 = vpop.permute.xlu1 %1027 }
 0xc22   :  { %v1030_v11 = vadd.f32 %v1028_v26, %v1024_v27 }
 0xc24   :  { %1872 = vtanh.f32 %v1030_v11 }
 0xc29   :  { %v1336_v48 = vpop.permute.xlu1 %1335 }
 0xc2a   :  { %v1873_v49 = vpop.eup %1872  ;;  %vm1338_vm14 = vcmp.eq.s32.totalorder %v1336_v48, 1 }
 0xc2b   :  { %v1032_v38 = vmul.f32 %v1873_v49, %v1017_v36 }
 0xc2d   :  { %v1037_v58 = vrot.slane %v1032_v38, 6 }
 0xc2f   :  { %1038 = vrot.lane.b32.xlu2 %v1037_v58, %s1895_s1 }
 0xc37   :  { %1439 = vperm.xlu2 %1770, %v1436_v28  }
 0xc89   :  { %v1039_v9 = vpop.permute.xlu2 %1038 }
 0xc8a   :  { %v1041_v59 = vsel %vm2677_vm8, %v1039_v9, 0.0  ;;  %vm2685_vm8 = vmmov %vm2681_vm1 }
 0xc8b   :  { %v1058_v43 = vrot.slane %v1041_v59, 2  ;;  %v1083_v63 = vsel %vm1060_vm7, %v1041_v59, %v1069_v39  ;;  %vm2683_vm7 = vmmov %vm2678_vm13 }
 0xc8c   :  { %v1084_v45 = vsel %vm2678_vm13, %v1083_v63, %v1071_v42  ;;  %vm2686_vm13 = vmmov %vm2681_vm1 }
 0xc8d   :  { %v1068_v6 = vsel %vm1064_vm0, %v2469_v30, %v1058_v43  ;;  %v1085_v41 = vsel %vm1064_vm0, %v1084_v45, %v1074_v54  ;;  %v1274_v30 = vpack.c.b16 %v1261_v40, %v1261_v40  ;;  %vm1287_vm0 = vcmask 588800  }
 0xc8e   :  { %v1089_v44 = vsel %vm2679_vm3, %v2371_v4, %v1085_v41  ;;  %v1090_v52 = vsel %vm2680_vm5, %v1068_v6, %v1088_v31  ;;  %vm2687_vm3 = vmmov %vm2681_vm1  ;;  %vm1540_vm5 = vcmask 1040384  }
 0xc8f   :  { %v1091_v0 = vpack.c.bf16 %v1090_v52, %v1089_v44  ;;  %v1292_v4 = vsel %vm2683_vm7, %v1274_v30, 0 }
 0xc90   :  { %1311 = vmatpush.bf16.msra.mxu1 %v1292_v4 }
 0xc91   :  { %1673 = vmatmul.msk.bf16.vlgmr.msrb.gmra.mxu2 %vm2681_vm1, %v1091_v0  ;;  %1674 = vmatmul.msk.bf16.vlgmr.msra.gmra.mxu3 %vm2682_vm2, %v1091_v0  ;;  %v1440_v58 = vpop.permute.xlu2 %1439  ;;  %vm1547_vm1 = vcmask 1024  }
 0xc92   :  { %1404 = vmatpush.bf16.msra.mxu2 %v1091_v0  ;;  %1509 = vmatpush.bf16.msrb.mxu3 %v1091_v0  ;;  %vm1444_vm6 = vcmp.eq.s32.totalorder %v1440_v58, 1 }
 0xc94   :  { %1312 = vmatpush.bf16.msra.mxu1 %v1760_v55 }
 0xc98   :  { %1313 = vmatpush.bf16.msra.mxu1 %v1759_v56 }
 0xc9c   :  { %1314 = vmatpush.bf16.msra.mxu1 %v1758_v13 }
 0xca0   :  { %1315 = vmatpush.bf16.msra.mxu1 %v1757_v16 }
 0xd14   :  { %v1158_v18 = vpop.f32.mrf.mxu2  ;;  %v1172_v19 = vpop.f32.mrf.mxu3 }
 0xd15   :  { %v1159_v22 = vadd.f32 %v1158_v18, %v1102_v7  ;;  %v1173_v23 = vadd.f32 %v1172_v19, %v1103_v21 }
 0xd17   :  { %1874 = vtanh.f32 %v1159_v22 }
 0xd18   :  { %1876 = vtanh.f32 %v1173_v23 }
 0xd1c   :  { %v1160_v25 = vpop.f32.mrf.mxu2  ;;  %v1174_v10 = vpop.f32.mrf.mxu3 }
 0xd1d   :  { %v1161_v29 = vadd.f32 %v1160_v25, %v1102_v7  ;;  %v1175_v20 = vadd.f32 %v1174_v10, %v1103_v21  ;;  %v1875_v27 = vpop.eup %1874 }
 0xd1e   :  { %v1877_v26 = vpop.eup %1876 }
 0xd1f   :  { %1878 = vtanh.f32 %v1161_v29 }
 0xd20   :  { %1880 = vtanh.f32 %v1175_v20 }
 0xd25   :  { %v1879_v11 = vpop.eup %1878 }
 0xd26   :  { %v1881_v35 = vpop.eup %1880  ;;  %v1181_v33 = vpack.c.bf16 %v1879_v11, %v1875_v27 }
 0xd27   :  { %v1182_v24 = vpack.c.bf16 %v1881_v35, %v1877_v26 }
 0xd28   :  { %1302 = vmatmul.bf16.vlgmr.msrb.gmra.mxu0 %v1181_v33 }
 0xd29   :  { %1723 = vmatmul.msk.bf16.vlgmr.msra.gmra.mxu1 %vm1287_vm0, %v1182_v24 }
 0xda5   :  { %v1303_v49 = vpop.f32.mrf.mxu0 }
 0xda6   :  { %v1317_v36 = vpop.f32.mrf.mxu1  ;;  %v1304_v38 = vadd.f32 %v1776_v8, %v1303_v49 }
 0xda8   :  { %v1318_v28 = vadd.f32 %v1317_v36, %v1304_v38 }
 0xdaa   :  { %v1339_v3 = vsel %vm1337_vm4, %v1318_v28, -1e+30  ;;  %v1446_v32 = vsel %vm1444_vm6, %v1318_v28, -1e+30 }
 0xdab   :  { %v1342_v60 = vsel %vm1341_vm11, %v1339_v3, -inf  ;;  %v1448_v61 = vsel %vm1341_vm11, %v1446_v32, -inf }
 0xdad   :  { %v1305_v46 = vpop.f32.mrf.mxu0 }
 0xdae   :  { %v1306_v50 = vadd.f32 %v1776_v8, %v1305_v46  ;;  %v1319_v1 = vpop.f32.mrf.mxu1 }
 0xdb0   :  { %v1320_v5 = vadd.f32 %v1319_v1, %v1306_v50 }
 0xdb2   :  { %v1340_v51 = vsel %vm1338_vm14, %v1320_v5, -1e+30  ;;  %v1447_v53 = vsel %vm1445_vm12, %v1320_v5, -1e+30 }
 0xdb3   :  { %v1343_v39 = vsel %vm1341_vm11, %v1340_v51, -inf  ;;  %v1449_v9 = vsel %vm1341_vm11, %v1447_v53, -inf }
 0xdb4   :  { %v1344_v42 = vmax.f32 %v1342_v60, %v1343_v39  ;;  %v1450_v59 = vmax.f32 %v1448_v61, %v1449_v9  ;;  %v1325_v9 = vld [vmem:[%s2649_s10 + $0x8] sm:$0xff] }
 0xdb6   :  { %v1345_v62 = vrot.slane %v1344_v42, 4  ;;  %v1451_v54 = vrot.slane %v1450_v59, 4 }
 0xdb8   :  { %v1346_v43 = vmax.f32 %v1344_v42, %v1345_v62  ;;  %v1452_v63 = vmax.f32 %v1450_v59, %v1451_v54  ;;  %v1324_v62 = vld [vmem:[%s2649_s10] sm:$0xff] }
 0xdba   :  { %v1347_v45 = vrot.slane %v1346_v43, 2  ;;  %v1453_v31 = vrot.slane %v1452_v63, 2 }
 0xdbc   :  { %v1348_v6 = vmax.f32 %v1346_v43, %v1347_v45  ;;  %v1454_v41 = vmax.f32 %v1452_v63, %v1453_v31  ;;  %v1326_v63 = vld [vmem:[%s2649_s10 + $0x10] sm:$0xf] }
 0xdbe   :  { %v1349_v44 = vrot.slane %v1348_v6, 1  ;;  %v1455_v52 = vrot.slane %v1454_v41, 1 }
 0xdc0   :  { %v1350_v0 = vmax.f32 %v1348_v6, %v1349_v44  ;;  %v1456_v34 = vmax.f32 %v1454_v41, %v1455_v52 }
 0xdc2   :  { %v1351_v40 = vsub.f32 %v1318_v28, %v1350_v0  ;;  %v1352_v30 = vsub.f32 %v1320_v5, %v1350_v0  ;;  %v1457_v2 = vsub.f32 %v1318_v28, %v1456_v34  ;;  %v1458_v4 = vsub.f32 %v1320_v5, %v1456_v34 }
 0xdc4   :  { %v1353_v57 = vmul.f32 1.442695, %v1351_v40  ;;  %v1355_v55 = vmul.f32 1.442695, %v1352_v30  ;;  %v1459_v47 = vmul.f32 1.442695, %v1457_v2 }
 0xdc5   :  { %v1461_v56 = vmul.f32 1.442695, %v1458_v4 }
 0xdc6   :  { %1882 = vpow2.f32 %v1353_v57 }
 0xdc7   :  { %1884 = vpow2.f32 %v1355_v55 }
 0xdc8   :  { %1886 = vpow2.f32 %v1459_v47 }
 0xdc9   :  { %1888 = vpow2.f32 %v1461_v56 }
 0xdcc   :  { %v1883_v12 = vpop.eup %1882 }
 0xdcd   :  { %v1885_v13 = vpop.eup %1884  ;;  %v1357_v14 = vsel %vm1337_vm4, %v1883_v12, 0.0 }
 0xdce   :  { %v1887_v16 = vpop.eup %1886  ;;  %v1358_v17 = vsel %vm1338_vm14, %v1885_v13, 0.0  ;;  %v1359_v18 = vsel %vm1341_vm11, %v1357_v14, 0.0 }
 0xdcf   :  { %v1889_v19 = vpop.eup %1888  ;;  %v1360_v7 = vsel %vm1341_vm11, %v1358_v17, 0.0  ;;  %v1463_v21 = vsel %vm1444_vm6, %v1887_v16, 0.0 }
 0xdd0   :  { %v1361_v22 = vadd.f32 %v1360_v7, %v1359_v18  ;;  %v1464_v23 = vsel %vm1445_vm12, %v1889_v19, 0.0  ;;  %v1465_v25 = vsel %vm1341_vm11, %v1463_v21, 0.0 }
 0xdd1   :  { %v1466_v10 = vsel %vm1341_vm11, %v1464_v23, 0.0 }
 0xdd2   :  { %v1362_v29 = vrot.slane %v1361_v22, 4  ;;  %v1467_v20 = vadd.f32 %v1466_v10, %v1465_v25 }
 0xdd4   :  { %v1363_v27 = vadd.f32 %v1362_v29, %v1361_v22  ;;  %v1468_v26 = vrot.slane %v1467_v20, 4 }
 0xdd6   :  { %v1364_v11 = vrot.slane %v1363_v27, 2  ;;  %v1469_v35 = vadd.f32 %v1468_v26, %v1467_v20 }
 0xdd8   :  { %v1365_v33 = vadd.f32 %v1364_v11, %v1363_v27  ;;  %v1470_v24 = vrot.slane %v1469_v35, 2  ;;  %v19_v11 = vstv %s2650_s11 }
 0xdd9   :  { %20 = vst [vmem:[#allocation2] sm:$0x1] %v19_v11 }
 0xdda   :  { %v1366_v37 = vrot.slane %v1365_v33, 1  ;;  %v1471_v8 = vadd.f32 %v1470_v24, %v1469_v35 }
 0xddc   :  { %v1367_v49 = vadd.f32 %v1366_v37, %v1365_v33  ;;  %v1472_v36 = vrot.slane %v1471_v8, 1 }
 0xdde   :  { %1890 = vrcp.f32 %v1367_v49  ;;  %v1473_v38 = vadd.f32 %v1472_v36, %v1471_v8 }
 0xde0   :  { %1892 = vrcp.f32 %v1473_v38  ;;  %v1777_v35 = vld [vmem:[#allocation2] ss:$0 sm:$0xff] }
 0xde4   :  { %v1891_v58 = vpop.eup %1890 }
 0xde5   :  { %v1369_v28 = vmul.f32 %v1891_v58, %v1357_v14  ;;  %v1370_v46 = vmul.f32 %v1891_v58, %v1358_v17 }
 0xde6   :  { %v1893_v15 = vpop.eup %1892 }
 0xde7   :  { %v1373_v48 = vpack.c.bf16 %v1370_v46, %v1369_v28  ;;  %v1475_v50 = vmul.f32 %v1893_v15, %v1463_v21  ;;  %v1476_v1 = vmul.f32 %v1893_v15, %v1464_v23 }
 0xde9   :  { %v1477_v3 = vadd.f32 %v1475_v50, %v1369_v28  ;;  %v1478_v32 = vadd.f32 %v1476_v1, %v1370_v46  ;;  %v1479_v5 = vpack.c.bf16 %v1476_v1, %v1475_v50 }
 0xdeb   :  { %1538 = vst.msk [vmem:[%s2648_s13] sm:$0xff] %vm1341_vm11, %v1477_v3  ;;  %1771 = vxpose.binary.xlu1.c.b16.start.end [1/2] (short) (narrow) %v1479_v5, %v1373_v48, 32 }
 0xdec   :  { %1539 = vst.msk [vmem:[%s2648_s13 + $0x8] sm:$0xff] %vm1341_vm11, %v1478_v32 }
 0xe97   :  { %v1772_v51 = vpop.trf.xlu1 }
 0xe98   :  { %1724 = vmatmul.msk.bf16.vlgmr.msra.gmra.mxu2 %vm1390_vm9, %v1772_v51 }
 0xe9f   :  { %v1773_v53 = vpop.trf.xlu1 }
 0xea0   :  { %1726 = vmatmul.msk.bf16.vlgmr.msrb.gmra.mxu3 %vm1390_vm9, %v1773_v53 }
 0xea7   :  { %v1774_v60 = vpop.trf.xlu1 }
 0xea8   :  { %1725 = vmatmul.msk.bf16.gmra.mxu2 %vm1390_vm9, %v1774_v60 }
 0xeaf   :  { %v1775_v61 = vpop.trf.xlu1 }
 0xeb0   :  { %1727 = vmatmul.msk.bf16.gmra.mxu3 %vm1390_vm9, %v1775_v61 }
 0xf1b   :  { %v1406_v39 = vpop.f32.mrf.mxu2 }
 0xf1c   :  { %v1415_v43 = vmul.f32 %v1406_v39, %v1324_v62 }
 0xf1e   :  { %v1418_v41 = vsel %vm2685_vm8, %v1415_v43, 0.0 }
 0xf23   :  { %v1408_v42 = vpop.f32.mrf.mxu2  ;;  %v1511_v59 = vpop.f32.mrf.mxu3 }
 0xf24   :  { %v1416_v54 = vmul.f32 %v1408_v42, %v1325_v9  ;;  %v1520_v30 = vmul.f32 %v1511_v59, %v1324_v62 }
 0xf26   :  { %v1419_v45 = vsel %vm2684_vm10, %v1416_v54, 0.0  ;;  %v1523_v55 = vsel %vm2687_vm3, %v1520_v30, 0.0 }
 0xf27   :  { %v1420_v52 = vadd.f32 %v1419_v45, %v1418_v41 }
 0xf2b   :  { %v1411_v31 = vpop.f32.mrf.mxu2  ;;  %v1513_v6 = vpop.f32.mrf.mxu3 }
 0xf2c   :  { %v1417_v44 = vmul.f32 %v1411_v31, %v1326_v63  ;;  %v1521_v0 = vmul.f32 %v1513_v6, %v1325_v9 }
 0xf2e   :  { %v1422_v34 = vsel %vm1421_vm15, %v1417_v44, 0.0  ;;  %v1524_v2 = vsel %vm2686_vm13, %v1521_v0, 0.0 }
 0xf2f   :  { %v1423_v40 = vadd.f32 %v1422_v34, %v1420_v52  ;;  %v1525_v56 = vadd.f32 %v1524_v2, %v1523_v55 }
 0xf31   :  { %1424 = vadd.xlane.f32.xlu2 %v1423_v40 }
 0xf33   :  { %v1413_v4 = vpop.f32.mrf.mxu2  ;;  %v1516_v57 = vpop.f32.mrf.mxu3 }
 0xf34   :  { %v1522_v47 = vmul.f32 %v1516_v57, %v1326_v63 }
 0xf36   :  { %v1526_v12 = vsel %vm1421_vm15, %v1522_v47, 0.0 }
 0xf37   :  { %v1527_v13 = vadd.f32 %v1526_v12, %v1525_v56 }
 0xf39   :  { %1528 = vadd.xlane.f32.xlu0 %v1527_v13 }
 0xf3b   :  { %v1518_v14 = vpop.f32.mrf.mxu3 }
 0xfa4   :  { %v1425_v16 = vpop.xlane.xlu2 %1424 }
 0xfa5   :  { %v1426_v17 = vrot.slane %v1425_v16, 4 }
 0xfa7   :  { %v1427_v18 = vadd.f32 %v1426_v17, %v1425_v16 }
 0xfa9   :  { %v1428_v19 = vrot.slane %v1427_v18, 2 }
 0xfab   :  { %v1429_v7 = vadd.f32 %v1428_v19, %v1427_v18 }
 0xfac   :  { %v1529_v21 = vpop.xlane.xlu0 %1528 }
 0xfad   :  { %v1530_v22 = vrot.slane %v1529_v21, 4  ;;  %v1430_v23 = vrot.slane %v1429_v7, 1 }
 0xfaf   :  { %v1531_v25 = vadd.f32 %v1530_v22, %v1529_v21  ;;  %v1431_v10 = vadd.f32 %v1430_v23, %v1429_v7 }
 0xfb1   :  { %v1532_v29 = vrot.slane %v1531_v25, 2  ;;  %1761 = vpush %v1431_v10 }
 0xfb3   :  { %v1533_v20 = vadd.f32 %v1532_v29, %v1531_v25 }
 0xfb5   :  { %v1534_v27 = vrot.slane %v1533_v20, 1 }
 0xfb7   :  { %v1535_v26 = vadd.f32 %v1534_v27, %v1533_v20 }
 0xfb9   :  { %1763 = vpush %v1535_v26 }
 0xfe2   :  { %s1762_s27 = spop %1761 }
 0xfe3   :  { %v1433_v33 = vstv %s1762_s27 }
 0xfea   :  { %s1764_s2 = spop %1763 }
 0xfeb   :  { %v1537_v24 = vstv %s1764_s2 }
 0xfec   :  { %v1541_v37 = vsel %vm1540_vm5, %v1433_v33, %v1537_v24 }
 0xfed   :  { %v1546_v8 = vadd.f32 %v1777_v35, %v1541_v37 }
 0xfef   :  { %1548 = vst.msk [vmem:[%s2651_s12] sm:$0x3] %vm1547_vm1, %v1546_v8 }

</bundles_post_ra>
